<compile_context>
chip_gen: v5e
topology: v5e:2x2
jax: 0.10.0
libtpu: 0.0.40
codegen_flags: <defaults>
</compile_context>

<pallas_src>
import jax
import jax.numpy as jnp
from jax.experimental import pallas as pl
from jax.experimental.pallas import tpu as pltpu


def _round_up(x, m):
    return ((x + m - 1) // m) * m


def _lane_padded_row_bytes(cols, dtype):
    """Per-row VMEM bytes of a (rows, cols) block after 128-lane padding."""
    return _round_up(max(int(cols), 1), 128) * jnp.dtype(dtype).itemsize


def _padded_block_bytes(rows, cols, dtype):
    """VMEM bytes of a (rows, cols) block after (sublane, 128-lane) padding."""
    itemsize = jnp.dtype(dtype).itemsize
    sub = 8 * max(1, 4 // itemsize)          # sublane packing for this dtype
    return (_round_up(max(int(rows), 1), sub)
            * _round_up(max(int(cols), 1), 128) * itemsize)


# ---------------------------------------------------------------------------
# Kernel
# ---------------------------------------------------------------------------
def hypernet_kernel(h_ref, emb_ref, w_rnn_ref, w_emb_ref, b0_ref, w1_ref,
                    b1_ref, out_ref):
    """One (tb, out_size) tile of the fused Hypernet MLP forward."""
    # Two K=32 MXU matmuls with f32 accumulation.  No lane-misaligned concat:
    # the inputs go to the MXU in their DMA dtype with zero extra casts.
    hidden = jnp.dot(h_ref[...], w_rnn_ref[...],
                     preferred_element_type=jnp.float32)
    hidden = hidden + jnp.dot(emb_ref[...], w_emb_ref[...],
                              preferred_element_type=jnp.float32)
    hidden = jnp.tanh(hidden + b0_ref[...])      # f32 bias add (VPU) + tanh (EUP)

    w1 = w1_ref[...]
    if hidden.dtype != w1.dtype:                 # cast MXU operand only if needed
        hidden = hidden.astype(w1.dtype)
    out = jnp.dot(hidden, w1, preferred_element_type=jnp.float32) + b1_ref[...]

    # NOTE: out_size=2 -> masked store (vst.msk); cheap (8 B/row of real data,
    # ~3% of total HBM traffic).
    # TODO(synk): a lane-dense transposed (out_size, tb) output would free
    # ~tb*512 B per padded VMEM buffer and store unmasked; skipped as a
    # secondary win to keep the lowering simple.
    out_ref[...] = out.astype(out_ref.dtype)


# ---------------------------------------------------------------------------
# Parameter prep / helpers
# ---------------------------------------------------------------------------
def prepare_hypernet_params(w_rnn, w_emb, first_bias, w1, b1):
    """One-time param prep (weights kept separate; no fused concat needed).

    w_rnn : (history_size, hidden0)   == PyTorch linear_rnn.weight.T
    w_emb : (embedding_size, hidden0) == PyTorch linear_emb.weight.T
    w1    : (hidden0, output_size)    == PyTorch linear_layers[0].weight.T
    """
    return (w_rnn, w_emb,
            first_bias.reshape(1, -1).astype(jnp.float32),
            w1,
            b1.reshape(1, -1).astype(jnp.float32))


def _split_params(hidden, param_sizes):
    """PyTorch `param_slices` semantics: bare array if a single slice."""
    if len(param_sizes) == 1:
        return hidden
    out, acc = [], 0
    for s in param_sizes:
        out.append(hidden[..., acc:acc + s])
        acc += s
    return tuple(out)


def _dense_forward(x, w, b0, w1, b1):
    hidden = jnp.tanh(jnp.dot(x, w, preferred_element_type=jnp.float32) + b0)
    if hidden.dtype != w1.dtype:
        hidden = hidden.astype(w1.dtype)
    return jnp.dot(hidden, w1, preferred_element_type=jnp.float32) + b1


# ---------------------------------------------------------------------------
# Forward wrapper
# ---------------------------------------------------------------------------
def hypernet_forward(h, emb, params, param_sizes, *, block_rows=4096,
                     min_pallas_rows=256, input_dtype=None):
    """Fused Hypernet forward.

    params      : output of prepare_hypernet_params.
    input_dtype : optional explicit DMA/MXU dtype.  NOTE: if h/emb are not
                  already in this dtype the cast is an extra XLA HBM pass and
                  can net-lose; prefer handing bf16 inputs in directly.
    """
    w_rnn, w_emb, b0, w1, b1 = params
    hidden0 = w_rnn.shape[1]
    out_size = w1.shape[1]

    if h is None and emb is None:
        # PyTorch: linear_layers[-1].bias + 0.0  (rank-1, no batch dim).
        return _split_params(b1.reshape(-1) + 0.0, param_sizes)

    if h is None or emb is None:
        # TODO(synk): single-input (use_history xor use_embedding) branch is a
        # tiny un-fused path; kept in plain JAX rather than a dedicated kernel.
        if emb is None:
            x, w = h, w_rnn
        else:
            x, w = emb, w_emb
        x2 = x.reshape((-1, x.shape[-1]))
        cd = x2.dtype
        out = _dense_forward(x2, w.astype(cd), b0, w1.astype(cd), b1)
        out = out.astype(jnp.float32).reshape(x.shape[:-1] + (out_size,))
        return _split_params(out, param_sizes)

    # Both inputs present: flatten any leading batch dims to rows.
    lead = h.shape[:-1]
    H, E = h.shape[-1], emb.shape[-1]
    h2 = h.reshape((-1, H))
    emb2 = emb.reshape((-1, E))
    B = h2.shape[0]

    if input_dtype is not None:
        # Explicit override: extra wrapper-side cast pass over the inputs.
        h2 = h2.astype(input_dtype)
        emb2 = emb2.astype(input_dtype)

    # DMA / MXU-operand dtype == the inputs' own dtype (no cast round-trips);
    # weights are cast once (a few KiB), accumulation stays f32 in-kernel.
    compute_dtype = jnp.promote_types(h2.dtype, emb2.dtype)
    h2 = h2.astype(compute_dtype)
    emb2 = emb2.astype(compute_dtype)
    w_rnn_c = w_rnn.astype(compute_dtype)
    w_emb_c = w_emb.astype(compute_dtype)
    w1_c = w1.astype(compute_dtype)

    if B < min_pallas_rows:
        # Tiny batch: a fused XLA epilogue beats a Pallas launch here.
        x = jnp.concatenate([h2, emb2], axis=-1)
        w_in = jnp.concatenate([w_rnn_c, w_emb_c], axis=0)
        hidden = _dense_forward(x, w_in, b0, w1_c, b1).astype(jnp.float32)
        hidden = hidden.reshape(lead + (out_size,))
        return _split_params(hidden, param_sizes)

    # ---- tile sizing (padded-VMEM aware, generation-safe) ------------------
    ROW_ALIGN = 256                       # mult. of 8 sublanes, 128 (v5e) & 256 (v6e/v7x)
    VMEM_BLOCK_BUDGET = 24 * 1024 * 1024  # fits every generation's VMEM with headroom

    per_row_db = 2 * (_lane_padded_row_bytes(H, compute_dtype)      # h (dbl-buffered)
                      + _lane_padded_row_bytes(E, compute_dtype)    # emb
                      + _lane_padded_row_bytes(out_size, jnp.float32))  # out (padded!)
    weights_db = 2 * (_padded_block_bytes(H, hidden0, compute_dtype)
                      + _padded_block_bytes(E, hidden0, compute_dtype)
                      + _padded_block_bytes(hidden0, out_size, compute_dtype)
                      + _padded_block_bytes(1, hidden0, jnp.float32)
                      + _padded_block_bytes(1, out_size, jnp.float32))

    if B < ROW_ALIGN:
        tb = _round_up(B, 8)              # only reachable with a forced low threshold
    else:
        tb = _round_up(min(block_rows, B), ROW_ALIGN)
        if B >= 2 * ROW_ALIGN:
            # >= 2 grid steps so the "parallel" axis feeds both v7x TensorCores.
            tb = min(tb, _round_up(pl.cdiv(B, 2), ROW_ALIGN))
        tb_cap = ((VMEM_BLOCK_BUDGET - weights_db) // per_row_db) // ROW_ALIGN * ROW_ALIGN
        tb = max(ROW_ALIGN, min(tb, max(ROW_ALIGN, tb_cap)))

    vmem_need = weights_db + per_row_db * tb
    compiler_kwargs = dict(dimension_semantics=("parallel",))
    if vmem_need > 12 * 1024 * 1024:
        # Getting close to / past v5e's 16 MiB scoped-VMEM default: raise the
        # limit explicitly (still far under every generation's physical VMEM).
        compiler_kwargs["vmem_limit_bytes"] = int(min(vmem_need + 4 * 1024 * 1024,
                                                      48 * 1024 * 1024))

    grid = (pl.cdiv(B, tb),)
    in_bytes = jnp.dtype(compute_dtype).itemsize
    cost = pl.CostEstimate(
        flops=int(2 * B * (H + E) * hidden0 + 2 * B * hidden0 * out_size),
        transcendentals=int(B * hidden0),
        bytes_accessed=int(B * (H + E) * in_bytes + B * out_size * 4
                           + ((H + E) * hidden0 + hidden0 * out_size) * in_bytes
                           + (hidden0 + out_size) * 4),
    )

    hidden = pl.pallas_call(
        hypernet_kernel,
        out_shape=jax.ShapeDtypeStruct((B, out_size), jnp.float32),
        grid=grid,
        in_specs=[
            pl.BlockSpec((tb, H), lambda i: (i, 0)),              # h tile (streamed)
            pl.BlockSpec((tb, E), lambda i: (i, 0)),              # emb tile (streamed)
            pl.BlockSpec((H, hidden0), lambda i: (0, 0)),         # W_rnn (VMEM-resident)
            pl.BlockSpec((E, hidden0), lambda i: (0, 0)),         # W_emb (VMEM-resident)
            pl.BlockSpec((1, hidden0), lambda i: (0, 0)),         # first_bias
            pl.BlockSpec((hidden0, out_size), lambda i: (0, 0)),  # W1
            pl.BlockSpec((1, out_size), lambda i: (0, 0)),        # b1
        ],
        out_specs=pl.BlockSpec((tb, out_size), lambda i: (i, 0)),
        compiler_params=pltpu.CompilerParams(**compiler_kwargs),
        cost_estimate=cost,
    )(h2, emb2, w_rnn_c, w_emb_c, b0, w1_c, b1)

    hidden = hidden.reshape(lead + (out_size,))
    return _split_params(hidden, param_sizes)


def hypernet_reference(h, emb, raw_params, param_sizes):
    """Pure-JAX f32 reference mirroring the PyTorch module math exactly."""
    w_rnn, w_emb, first_bias, w1, b1 = raw_params
    hidden = first_bias + h @ w_rnn + emb @ w_emb
    hidden = jnp.tanh(hidden) @ w1 + b1
    return _split_params(hidden, param_sizes)


if __name__ == "__main__":
    history_size = 32
    embedding_size = 32
    hidden0 = 32            # hidden_sizes = [32]
    param_sizes = [1, 1]    # output_size = 2
    out_size = sum(param_sizes)

    key = jax.random.PRNGKey(0)
    k_h, k_e, k_wr, k_we, k_b0, k_w1, k_b1 = jax.random.split(key, 7)

    # Parameters (pre-transposed to (in, out)).
    w_rnn = 0.1 * jax.random.normal(k_wr, (history_size, hidden0), jnp.float32)
    w_emb = 0.1 * jax.random.normal(k_we, (embedding_size, hidden0), jnp.float32)
    first_bias = jax.random.uniform(k_b0, (hidden0,), jnp.float32, -0.1, 0.1)
    w1 = 0.1 * jax.random.normal(k_w1, (hidden0, out_size), jnp.float32)
    b1 = jax.random.uniform(k_b1, (out_size,), jnp.float32, -0.1, 0.1)
    raw_params = (w_rnn, w_emb, first_bias, w1, b1)
    params = prepare_hypernet_params(*raw_params)

    # ---- gridded Pallas path (2 "parallel" row tiles -> both v7x TCs) ------
    B = 1024
    h = jax.random.normal(k_h, (B, history_size), dtype=jnp.float32)
    emb = jax.random.normal(k_e, (B, embedding_size), dtype=jnp.float32)

    out = jax.block_until_ready(hypernet_forward(h, emb, params, param_sizes))
    ref = hypernet_reference(h, emb, raw_params, param_sizes)
    for o, r in zip(out, ref):
        assert o.shape == r.shape, (o.shape, r.shape)
        assert jnp.allclose(o, r, atol=1e-5, rtol=1e-5), "f32 kernel mismatch"

    # ---- bf16 DMA/MXU-operand path: inputs *arrive* bf16, f32 accumulate ---
    h_bf = h.astype(jnp.bfloat16)
    emb_bf = emb.astype(jnp.bfloat16)
    out_bf = jax.block_until_ready(
        hypernet_forward(h_bf, emb_bf, params, param_sizes))
    ref_bf = hypernet_reference(h_bf.astype(jnp.float32),
                                emb_bf.astype(jnp.float32),
                                raw_params, param_sizes)
    for o, r in zip(out_bf, ref_bf):
        assert o.shape == r.shape, (o.shape, r.shape)
        assert jnp.allclose(o, r, atol=2e-2, rtol=2e-2), "bf16 kernel mismatch"

    # ---- partial last tile (B=300 forced onto the kernel path) -------------
    B2 = 300
    out_p = jax.block_until_ready(
        hypernet_forward(h[:B2], emb[:B2], params, param_sizes, min_pallas_rows=1))
    ref_p = hypernet_reference(h[:B2], emb[:B2], raw_params, param_sizes)
    for o, r in zip(out_p, ref_p):
        assert jnp.allclose(o, r, atol=1e-5, rtol=1e-5), "partial-tile mismatch"

    # ---- tiny-batch fallback (plain JAX, no kernel launch) -----------------
    out_small = hypernet_forward(h[:8], emb[:8], params, param_sizes)
    ref_small = hypernet_reference(h[:8], emb[:8], raw_params, param_sizes)
    for o, r in zip(out_small, ref_small):
        assert jnp.allclose(o, r, atol=1e-5, rtol=1e-5), "small-batch mismatch"

    # ---- single-input branch (emb=None) -------------------------------------
    out_h_only = hypernet_forward(h[:8], None, params, param_sizes)
    ref_h_only = _split_params(jnp.tanh(first_bias + h[:8] @ w_rnn) @ w1 + b1,
                               param_sizes)
    for o, r in zip(out_h_only, ref_h_only):
        assert jnp.allclose(o, r, atol=1e-5, rtol=1e-5), "h-only mismatch"

    # ---- degenerate branch (h=None, emb=None): last layer's bias ------------
    out_none = hypernet_forward(None, None, params, param_sizes)
    assert isinstance(out_none, tuple) and len(out_none) == 2
    assert jnp.allclose(jnp.concatenate(out_none), b1, atol=1e-7)

    print("KERNEL_OK")
</pallas_src>

<mosaic_0001>
module attributes {stable_mosaic.version = 11 : i64} {
  func.func @hypernet_kernel(%arg0: i32, %arg1: memref<512x32xf32, #tpu.memory_space<vmem>>, %arg2: memref<512x32xf32, #tpu.memory_space<vmem>>, %arg3: memref<32x32xf32, #tpu.memory_space<vmem>>, %arg4: memref<32x32xf32, #tpu.memory_space<vmem>>, %arg5: memref<1x32xf32, #tpu.memory_space<vmem>>, %arg6: memref<32x2xf32, #tpu.memory_space<vmem>>, %arg7: memref<1x2xf32, #tpu.memory_space<vmem>>, %arg8: memref<512x2xf32, #tpu.memory_space<vmem>>) attributes {dimension_semantics = [#tpu.dimension_semantics<parallel>], iteration_bounds = array<i64: 2>, scalar_prefetch = 0 : i64, scratch_operands = 0 : i64, tpu.core_type = #tpu.core_type<tc>, window_params = [{transform_indices = @transform_0, window_bounds = array<i64: 512, 32>}, {transform_indices = @transform_1, window_bounds = array<i64: 512, 32>}, {pipeline_mode = #tpu.pipeline_mode<synchronous>, transform_indices = @transform_2, window_bounds = array<i64: 32, 32>}, {pipeline_mode = #tpu.pipeline_mode<synchronous>, transform_indices = @transform_3, window_bounds = array<i64: 32, 32>}, {pipeline_mode = #tpu.pipeline_mode<synchronous>, transform_indices = @transform_4, window_bounds = array<i64: 1, 32>}, {pipeline_mode = #tpu.pipeline_mode<synchronous>, transform_indices = @transform_5, window_bounds = array<i64: 32, 2>}, {pipeline_mode = #tpu.pipeline_mode<synchronous>, transform_indices = @transform_6, window_bounds = array<i64: 1, 2>}, {transform_indices = @transform_7, window_bounds = array<i64: 512, 2>}]} {
    %c0 = arith.constant 0 : index
    %c0_0 = arith.constant 0 : index
    %0 = vector.load %arg1[%c0, %c0_0] : memref<512x32xf32, #tpu.memory_space<vmem>>, vector<512x32xf32>
    %c0_1 = arith.constant 0 : index
    %c0_2 = arith.constant 0 : index
    %1 = vector.load %arg3[%c0_1, %c0_2] : memref<32x32xf32, #tpu.memory_space<vmem>>, vector<32x32xf32>
    %cst = arith.constant dense<0.000000e+00> : vector<512x32xf32>
    %2 = tpu.matmul %0, %1, %cst {dimension_numbers = #tpu.dot_dimension_numbers<[1], [0], [0], [1], [0, 0, 1, 1], [], []>} : vector<512x32xf32>, vector<32x32xf32>, vector<512x32xf32> -> vector<512x32xf32>
    %c0_3 = arith.constant 0 : index
    %c0_4 = arith.constant 0 : index
    %3 = vector.load %arg2[%c0_3, %c0_4] : memref<512x32xf32, #tpu.memory_space<vmem>>, vector<512x32xf32>
    %c0_5 = arith.constant 0 : index
    %c0_6 = arith.constant 0 : index
    %4 = vector.load %arg4[%c0_5, %c0_6] : memref<32x32xf32, #tpu.memory_space<vmem>>, vector<32x32xf32>
    %cst_7 = arith.constant dense<0.000000e+00> : vector<512x32xf32>
    %5 = tpu.matmul %3, %4, %cst_7 {dimension_numbers = #tpu.dot_dimension_numbers<[1], [0], [0], [1], [0, 0, 1, 1], [], []>} : vector<512x32xf32>, vector<32x32xf32>, vector<512x32xf32> -> vector<512x32xf32>
    %6 = arith.addf %2, %5 : vector<512x32xf32>
    %c0_8 = arith.constant 0 : index
    %c0_9 = arith.constant 0 : index
    %7 = vector.load %arg5[%c0_8, %c0_9] : memref<1x32xf32, #tpu.memory_space<vmem>>, vector<1x32xf32>
    %8 = vector.broadcast %7 : vector<1x32xf32> to vector<512x32xf32>
    %9 = arith.addf %6, %8 : vector<512x32xf32>
    %10 = math.tanh %9 : vector<512x32xf32>
    %c0_10 = arith.constant 0 : index
    %c0_11 = arith.constant 0 : index
    %11 = vector.load %arg6[%c0_10, %c0_11] : memref<32x2xf32, #tpu.memory_space<vmem>>, vector<32x2xf32>
    %cst_12 = arith.constant dense<0.000000e+00> : vector<512x2xf32>
    %12 = tpu.matmul %10, %11, %cst_12 {dimension_numbers = #tpu.dot_dimension_numbers<[1], [0], [0], [1], [0, 0, 1, 1], [], []>} : vector<512x32xf32>, vector<32x2xf32>, vector<512x2xf32> -> vector<512x2xf32>
    %c0_13 = arith.constant 0 : index
    %c0_14 = arith.constant 0 : index
    %13 = vector.load %arg7[%c0_13, %c0_14] : memref<1x2xf32, #tpu.memory_space<vmem>>, vector<1x2xf32>
    %14 = vector.broadcast %13 : vector<1x2xf32> to vector<512x2xf32>
    %15 = arith.addf %12, %14 : vector<512x2xf32>
    %c0_15 = arith.constant 0 : index
    %c0_16 = arith.constant 0 : index
    %16 = vector.load %arg8[%c0_15, %c0_16] : memref<512x2xf32, #tpu.memory_space<vmem>>, vector<512x2xf32>
    tpu.vector_store %arg8[%c0_15, %c0_16], %15 {strides = array<i32>} : memref<512x2xf32, #tpu.memory_space<vmem>>, vector<512x2xf32>,
    return
  }
  func.func @transform_0(%arg0: i32) -> (i32, i32) {
    %c0_i32 = arith.constant 0 : i32
    %c0_i32_0 = arith.constant 0 : i32
    return %arg0, %c0_i32 : i32, i32
  }
  func.func @transform_1(%arg0: i32) -> (i32, i32) {
    %c0_i32 = arith.constant 0 : i32
    %c0_i32_0 = arith.constant 0 : i32
    return %arg0, %c0_i32 : i32, i32
  }
  func.func @transform_2(%arg0: i32) -> (i32, i32) {
    %c0_i32 = arith.constant 0 : i32
    %c0_i32_0 = arith.constant 0 : i32
    %c0_i32_1 = arith.constant 0 : i32
    return %c0_i32, %c0_i32_0 : i32, i32
  }
  func.func @transform_3(%arg0: i32) -> (i32, i32) {
    %c0_i32 = arith.constant 0 : i32
    %c0_i32_0 = arith.constant 0 : i32
    %c0_i32_1 = arith.constant 0 : i32
    return %c0_i32, %c0_i32_0 : i32, i32
  }
  func.func @transform_4(%arg0: i32) -> (i32, i32) {
    %c0_i32 = arith.constant 0 : i32
    %c0_i32_0 = arith.constant 0 : i32
    %c0_i32_1 = arith.constant 0 : i32
    return %c0_i32, %c0_i32_0 : i32, i32
  }
  func.func @transform_5(%arg0: i32) -> (i32, i32) {
    %c0_i32 = arith.constant 0 : i32
    %c0_i32_0 = arith.constant 0 : i32
    %c0_i32_1 = arith.constant 0 : i32
    return %c0_i32, %c0_i32_0 : i32, i32
  }
  func.func @transform_6(%arg0: i32) -> (i32, i32) {
    %c0_i32 = arith.constant 0 : i32
    %c0_i32_0 = arith.constant 0 : i32
    %c0_i32_1 = arith.constant 0 : i32
    return %c0_i32, %c0_i32_0 : i32, i32
  }
  func.func @transform_7(%arg0: i32) -> (i32, i32) {
    %c0_i32 = arith.constant 0 : i32
    %c0_i32_0 = arith.constant 0 : i32
    return %arg0, %c0_i32 : i32, i32
  }
}

</mosaic_0001>

<bundles_post_ra>
// kernel: tpu_custom_call.1
= control target key start
LH: loop header
LB: loop body
LE: loop exit
PB: predicated region body
PF: predicated region fallthrough
CT: control target
= control target key end

     0   :  { %s2322_s24 = smov 0   ;;  %s3016_s0 = inlined_call_operand.vmem [shape: f32[1024,32], index: 0, kind: input, shape index: {}]   ;;  %s3017_s1 = inlined_call_operand.vmem [shape: f32[1024,32], index: 1, kind: input, shape index: {}]   ;;  %s3018_s2 = inlined_call_operand.vmem [shape: f32[32,32], index: 2, kind: input, shape index: {}]   ;;  %s3019_s3 = inlined_call_operand.vmem [shape: f32[32,32], index: 3, kind: input, shape index: {}]   ;;  %s3020_s4 = inlined_call_operand.vmem [shape: f32[1,32], index: 4, kind: input, shape index: {}]   ;;  %s3021_s5 = inlined_call_operand.vmem [shape: f32[32,2], index: 5, kind: input, shape index: {}]   ;;  %s3022_s6 = inlined_call_operand.vmem [shape: f32[1,2], index: 6, kind: input, shape index: {}]   ;;  %s3023_s7 = inlined_call_operand.vmem [shape: f32[1024,2], index: 7, kind: output, shape index: {}]  }
   0x1 LB: > { %s1917_s25 = sadd.s32 4294967295, %s2280_s24   ;;  %p1921_p0 = scmp.ge.s32.totalorder %s2280_s24, 1  ;;  %s2280_s24 = sphi %s2322_s24, %s17_s24  }
   0x2   : > { %p249_p1 = scmp.lt.s32.totalorder %s2280_s24, 3 }
   0x4   : > { %p250_p2 = pnand %p1921_p0, %p249_p1 }
   0x5   : > { %s1922_s9 = sshll.u32 (!%p250_p2), %s1917_s25, 6 }
   0x6   : > { %253 = sbr.rel (%p250_p2) target bundleno = 668 (0x29c), region = 48  ;;  %p287_p3 = scmp.lt.s32.totalorder (!%p250_p2), %s1922_s9, 127 }
   0xb   : > { %v439_v0 = vld [vmem:[%s3019_s3 + $0x18] sm:$0xff]  ;;  %v438_v2 = vld [vmem:[%s3019_s3 + $0x10] sm:$0xff]  ;;  %v437_v4 = vld [vmem:[%s3019_s3 + $0x8] sm:$0xff]  ;;  %s3025_s9 = smov (!%p287_p3, %s1922_s9), 127  ;;  %vm440_vm0 = vcmask 261120   ;;  %vm1784_vm1 = vcmask 15360  }
   0xc   : > { %v371_v1 = vld [vmem:[%s3018_s2 + $0x18] sm:$0xff]  ;;  %645 = vmatpush.msra.mxu0 %v439_v0  ;;  %2122 = vmatpush.msra.mxu3 %v439_v0  ;;  %v370_v3 = vld [vmem:[%s3018_s2 + $0x10] sm:$0xff]  ;;  %v369_v5 = vld [vmem:[%s3018_s2 + $0x8] sm:$0xff]  ;;  %s2354_s20 = sshll.u32 %s3025_s9, 3 }
   0xd   : > { %1046 = vmatpush.msra.mxu1 %v371_v1  ;;  %v436_v6 = vld [vmem:[%s3019_s3] sm:$0xff]  ;;  %s2360_s23 = scalar_lea.vmem %s3017_s1, %s2354_s20  ;;  %s2366_s27 = scalar_lea.vmem %s3016_s0, %s2354_s20  ;;  %v1378_v47 = vld [vmem:[%s3021_s5 + $0x18] sm:$0xff]  ;;  %v1377_v48 = vld [vmem:[%s3021_s5 + $0x10] sm:$0xff] }
   0xe   : > { %646 = vmatpush.msra.mxu0 %v438_v2  ;;  %2123 = vmatpush.msra.mxu3 %v438_v2  ;;  %v368_v7 = vld [vmem:[%s3018_s2] sm:$0xff]  ;;  %v373_v11 = vld [vmem:[%s2360_s23 + $0x8] sm:$0xff]  ;;  %v374_v14 = vld [vmem:[%s2360_s23 + $0x10] sm:$0xff]  ;;  %s2664_s19 = scalar_lea.vmem %s3023_s7, %s2354_s20 }
   0xf   : > { %1047 = vmatpush.msra.mxu1 %v370_v3  ;;  %v372_v8 = vld [vmem:[%s2360_s23] sm:$0xff]  ;;  %v421_v12 = vld [vmem:[%s2360_s23 + $0x188] sm:$0xff]  ;;  %v422_v15 = vld [vmem:[%s2360_s23 + $0x190] sm:$0xff]  ;;  %1587 = vmatpush.msra.mxu2 %v1378_v47 }
  0x10   : > { %647 = vmatpush.msra.mxu0 %v437_v4  ;;  %2124 = vmatpush.msra.mxu3 %v437_v4  ;;  %v420_v9 = vld [vmem:[%s2360_s23 + $0x180] sm:$0xff]  ;;  %v305_v13 = vld [vmem:[%s2366_s27 + $0x8] sm:$0xff]  ;;  %v306_v16 = vld [vmem:[%s2366_s27 + $0x10] sm:$0xff] }
  0x11   : > { %1048 = vmatpush.msra.mxu1 %v369_v5  ;;  %v304_v10 = vld [vmem:[%s2366_s27] sm:$0xff]  ;;  %v375_v17 = vld [vmem:[%s2360_s23 + $0x18] sm:$0xff]  ;;  %v377_v23 = vld [vmem:[%s2360_s23 + $0x28] sm:$0xff]  ;;  %1588 = vmatpush.msra.mxu2 %v1377_v48 }
  0x12   : > { %648 = vmatpush.msra.mxu0 %v436_v6  ;;  %2125 = vmatpush.msra.mxu3 %v436_v6  ;;  %v423_v18 = vld [vmem:[%s2360_s23 + $0x198] sm:$0xff]  ;;  %v376_v20 = vld [vmem:[%s2360_s23 + $0x20] sm:$0xff]  ;;  %v425_v24 = vld [vmem:[%s2360_s23 + $0x1a8] sm:$0xff] }
  0x13   : > { %1049 = vmatpush.msra.mxu1 %v368_v7  ;;  %1928 = vmatmul.msk.f32.vlgmr.msra.gmra.mxu0 %vm440_vm0, %v372_v8  ;;  %v307_v19 = vld [vmem:[%s2366_s27 + $0x18] sm:$0xff]  ;;  %v424_v21 = vld [vmem:[%s2360_s23 + $0x1a0] sm:$0xff]  ;;  %v309_v25 = vld [vmem:[%s2366_s27 + $0x28] sm:$0xff] }
  0x14   : > { %1976 = vmatmul.msk.f32.vlgmr.msra.gmra.mxu3 %vm440_vm0, %v420_v9  ;;  %1992 = vmatmul.msk.f32.vlgmr.msra.gmra.mxu1 %vm440_vm0, %v304_v10  ;;  %v308_v22 = vld [vmem:[%s2366_s27 + $0x20] sm:$0xff]  ;;  %v378_v26 = vld [vmem:[%s2360_s23 + $0x30] sm:$0xff]  ;;  %v379_v29 = vld [vmem:[%s2360_s23 + $0x38] sm:$0xff] }
  0x15   : > { %2126 = vmatpush.msrb.mxu3 %v371_v1  ;;  %v426_v27 = vld [vmem:[%s2360_s23 + $0x1b0] sm:$0xff]  ;;  %v427_v30 = vld [vmem:[%s2360_s23 + $0x1b8] sm:$0xff]  ;;  %v380_v32 = vld [vmem:[%s2360_s23 + $0x40] sm:$0xff] }
  0x16   : > { %v310_v28 = vld [vmem:[%s2366_s27 + $0x30] sm:$0xff]  ;;  %v311_v31 = vld [vmem:[%s2366_s27 + $0x38] sm:$0xff]  ;;  %v428_v33 = vld [vmem:[%s2360_s23 + $0x1c0] sm:$0xff] }
  0x17   : > { %2127 = vmatpush.msrb.mxu3 %v370_v3  ;;  %v312_v34 = vld [vmem:[%s2366_s27 + $0x40] sm:$0xff]  ;;  %v381_v35 = vld [vmem:[%s2360_s23 + $0x48] sm:$0xff]  ;;  %v382_v38 = vld [vmem:[%s2360_s23 + $0x50] sm:$0xff] }
  0x18   : > { %v429_v36 = vld [vmem:[%s2360_s23 + $0x1c8] sm:$0xff]  ;;  %v430_v39 = vld [vmem:[%s2360_s23 + $0x1d0] sm:$0xff]  ;;  %v383_v41 = vld [vmem:[%s2360_s23 + $0x58] sm:$0xff] }
  0x19   : > { %2128 = vmatpush.msrb.mxu3 %v369_v5  ;;  %v313_v37 = vld [vmem:[%s2366_s27 + $0x48] sm:$0xff]  ;;  %v314_v40 = vld [vmem:[%s2366_s27 + $0x50] sm:$0xff]  ;;  %v431_v42 = vld [vmem:[%s2360_s23 + $0x1d8] sm:$0xff] }
  0x1a   : > { %v315_v43 = vld [vmem:[%s2366_s27 + $0x58] sm:$0xff]  ;;  %v384_v44 = vld [vmem:[%s2360_s23 + $0x60] sm:$0xff]  ;;  %v385_v49 = vld [vmem:[%s2360_s23 + $0x68] sm:$0xff] }
  0x1b   : > { %1929 = vmatmul.msk.f32.gmra.mxu0 %vm440_vm0, %v373_v11  ;;  %2129 = vmatpush.msrb.mxu3 %v368_v7  ;;  %v432_v45 = vld [vmem:[%s2360_s23 + $0x1e0] sm:$0xff]  ;;  %v433_v50 = vld [vmem:[%s2360_s23 + $0x1e8] sm:$0xff]  ;;  %v386_v54 = vld [vmem:[%s2360_s23 + $0x70] sm:$0xff] }
  0x1c   : > { %1977 = vmatmul.msk.f32.gmra.mxu3 %vm440_vm0, %v421_v12  ;;  %1993 = vmatmul.msk.f32.gmra.mxu1 %vm440_vm0, %v305_v13  ;;  %v316_v46 = vld [vmem:[%s2366_s27 + $0x60] sm:$0xff]  ;;  %v317_v51 = vld [vmem:[%s2366_s27 + $0x68] sm:$0xff]  ;;  %v434_v55 = vld [vmem:[%s2360_s23 + $0x1f0] sm:$0xff] }
  0x1d   : > { %2130 = vmatpush.msra.mxu3 %v1378_v47  ;;  %v1376_v52 = vld [vmem:[%s3021_s5 + $0x8] sm:$0xff]  ;;  %v1375_v53 = vld [vmem:[%s3021_s5] sm:$0xff]  ;;  %v318_v56 = vld [vmem:[%s2366_s27 + $0x70] sm:$0xff] }
  0x1e   : > { %1589 = vmatpush.msra.mxu2 %v1376_v52  ;;  %v387_v57 = vld [vmem:[%s2360_s23 + $0x78] sm:$0xff]  ;;  %v2479_v61 = vld [vmem:[%s3020_s4] ss:$0 sm:$0xff]  ;;  %v389_v6 = vld [vmem:[%s2360_s23 + $0x88] sm:$0xff] }
  0x1f   : > { %2131 = vmatpush.msra.mxu3 %v1377_v48  ;;  %v435_v58 = vld [vmem:[%s2360_s23 + $0x1f8] sm:$0xff]  ;;  %v388_v62 = vld [vmem:[%s2360_s23 + $0x80] sm:$0xff]  ;;  %v321_v8 = vld [vmem:[%s2366_s27 + $0x88] sm:$0xff] }
  0x20   : > { %1590 = vmatpush.msra.mxu2 %v1375_v53  ;;  %v319_v59 = vld [vmem:[%s2366_s27 + $0x78] sm:$0xff]  ;;  %v320_v0 = vld [vmem:[%s2366_s27 + $0x80] sm:$0xff]  ;;  %v353_v9 = vld [vmem:[%s2366_s27 + $0x188] sm:$0xff] }
  0x21   : > { %2132 = vmatpush.msra.mxu3 %v1376_v52  ;;  %v352_v1 = vld [vmem:[%s2366_s27 + $0x180] sm:$0xff] }
  0x23   : > { %1930 = vmatmul.msk.f32.gmra.mxu0 %vm440_vm0, %v374_v14  ;;  %2133 = vmatpush.msra.mxu3 %v1375_v53  ;;  %v326_v53 = vld [vmem:[%s2366_s27 + $0xb0] sm:$0xff] }
  0x24   : > { %1978 = vmatmul.msk.f32.gmra.mxu3 %vm440_vm0, %v422_v15  ;;  %1994 = vmatmul.msk.f32.gmra.mxu1 %vm440_vm0, %v306_v16  ;;  %v390_v15 = vld [vmem:[%s2360_s23 + $0x90] sm:$0xff] }
  0x2b   : > { %1931 = vmatmul.msk.f32.gmra.mxu0 %vm440_vm0, %v375_v17  ;;  %v322_v17 = vld [vmem:[%s2366_s27 + $0x90] sm:$0xff] }
  0x2c   : > { %1979 = vmatmul.msk.f32.gmra.mxu3 %vm440_vm0, %v423_v18  ;;  %1995 = vmatmul.msk.f32.gmra.mxu1 %vm440_vm0, %v307_v19  ;;  %v354_v18 = vld [vmem:[%s2366_s27 + $0x190] sm:$0xff] }
  0x33   : > { %1932 = vmatmul.msk.f32.gmra.mxu0 %vm440_vm0, %v376_v20 }
  0x34   : > { %1980 = vmatmul.msk.f32.gmra.mxu3 %vm440_vm0, %v424_v21  ;;  %1996 = vmatmul.msk.f32.gmra.mxu1 %vm440_vm0, %v308_v22 }
  0x3b   : > { %1933 = vmatmul.msk.f32.gmra.mxu0 %vm440_vm0, %v377_v23 }
  0x3c   : > { %1981 = vmatmul.msk.f32.gmra.mxu3 %vm440_vm0, %v425_v24  ;;  %1997 = vmatmul.msk.f32.gmra.mxu1 %vm440_vm0, %v309_v25  ;;  %v391_v24 = vld [vmem:[%s2360_s23 + $0x98] sm:$0xff] }
  0x43   : > { %1934 = vmatmul.msk.f32.gmra.mxu0 %vm440_vm0, %v378_v26  ;;  %v323_v26 = vld [vmem:[%s2366_s27 + $0x98] sm:$0xff] }
  0x44   : > { %1982 = vmatmul.msk.f32.gmra.mxu3 %vm440_vm0, %v426_v27  ;;  %1998 = vmatmul.msk.f32.gmra.mxu1 %vm440_vm0, %v310_v28  ;;  %v355_v27 = vld [vmem:[%s2366_s27 + $0x198] sm:$0xff] }
  0x4b   : > { %1935 = vmatmul.msk.f32.gmra.mxu0 %vm440_vm0, %v379_v29 }
  0x4c   : > { %1983 = vmatmul.msk.f32.gmra.mxu3 %vm440_vm0, %v427_v30  ;;  %1999 = vmatmul.msk.f32.gmra.mxu1 %vm440_vm0, %v311_v31 }
  0x53   : > { %1936 = vmatmul.msk.f32.gmra.mxu0 %vm440_vm0, %v380_v32 }
  0x54   : > { %1984 = vmatmul.msk.f32.gmra.mxu3 %vm440_vm0, %v428_v33  ;;  %2000 = vmatmul.msk.f32.gmra.mxu1 %vm440_vm0, %v312_v34  ;;  %v392_v33 = vld [vmem:[%s2360_s23 + $0xa0] sm:$0xff] }
  0x5b   : > { %1937 = vmatmul.msk.f32.gmra.mxu0 %vm440_vm0, %v381_v35  ;;  %v324_v35 = vld [vmem:[%s2366_s27 + $0xa0] sm:$0xff] }
  0x5c   : > { %1985 = vmatmul.msk.f32.gmra.mxu3 %vm440_vm0, %v429_v36  ;;  %2001 = vmatmul.msk.f32.gmra.mxu1 %vm440_vm0, %v313_v37  ;;  %v356_v36 = vld [vmem:[%s2366_s27 + $0x1a0] sm:$0xff] }
  0x63   : > { %1938 = vmatmul.msk.f32.gmra.mxu0 %vm440_vm0, %v382_v38 }
  0x64   : > { %1986 = vmatmul.msk.f32.gmra.mxu3 %vm440_vm0, %v430_v39  ;;  %2002 = vmatmul.msk.f32.gmra.mxu1 %vm440_vm0, %v314_v40 }
  0x6b   : > { %1939 = vmatmul.msk.f32.gmra.mxu0 %vm440_vm0, %v383_v41 }
  0x6c   : > { %1987 = vmatmul.msk.f32.gmra.mxu3 %vm440_vm0, %v431_v42  ;;  %2003 = vmatmul.msk.f32.gmra.mxu1 %vm440_vm0, %v315_v43  ;;  %v393_v42 = vld [vmem:[%s2360_s23 + $0xa8] sm:$0xff] }
  0x73   : > { %1940 = vmatmul.msk.f32.gmra.mxu0 %vm440_vm0, %v384_v44  ;;  %v325_v44 = vld [vmem:[%s2366_s27 + $0xa8] sm:$0xff] }
  0x74   : > { %1988 = vmatmul.msk.f32.gmra.mxu3 %vm440_vm0, %v432_v45  ;;  %2004 = vmatmul.msk.f32.gmra.mxu1 %vm440_vm0, %v316_v46  ;;  %v357_v45 = vld [vmem:[%s2366_s27 + $0x1a8] sm:$0xff] }
  0x7b   : > { %1941 = vmatmul.msk.f32.gmra.mxu0 %vm440_vm0, %v385_v49 }
  0x7c   : > { %1989 = vmatmul.msk.f32.gmra.mxu3 %vm440_vm0, %v433_v50  ;;  %2005 = vmatmul.msk.f32.gmra.mxu1 %vm440_vm0, %v317_v51  ;;  %v394_v51 = vld [vmem:[%s2360_s23 + $0xb0] sm:$0xff] }
  0x83   : > { %1942 = vmatmul.msk.f32.gmra.mxu0 %vm440_vm0, %v386_v54  ;;  %v358_v54 = vld [vmem:[%s2366_s27 + $0x1b0] sm:$0xff] }
  0x84   : > { %1990 = vmatmul.msk.f32.gmra.mxu3 %vm440_vm0, %v434_v55  ;;  %2006 = vmatmul.msk.f32.gmra.mxu1 %vm440_vm0, %v318_v56 }
  0x8b   : > { %1943 = vmatmul.msk.f32.gmra.mxu0 %vm440_vm0, %v387_v57 }
  0x8c   : > { %1991 = vmatmul.msk.f32.gmra.mxu3 %vm440_vm0, %v435_v58  ;;  %2007 = vmatmul.msk.f32.gmra.mxu1 %vm440_vm0, %v319_v59 }
  0x90   : > { %v650_v60 = vpop.f32.mrf.mxu0 }
  0x91   : > { %v1051_v63 = vpop.f32.mrf.mxu1 }
  0x92   : > { %v1052_v2 = vadd.f32 %v1051_v63, %v650_v60  ;;  %v395_v60 = vld [vmem:[%s2360_s23 + $0xb8] sm:$0xff] }
  0x93   : > { %1944 = vmatmul.msk.f32.gmra.mxu0 %vm440_vm0, %v388_v62  ;;  %v327_v63 = vld [vmem:[%s2366_s27 + $0xb8] sm:$0xff] }
  0x94   : > { %v1247_v3 = vadd.f32 %v2479_v61, %v1052_v2  ;;  %2008 = vmatmul.msk.f32.gmra.mxu1 %vm440_vm0, %v320_v0  ;;  %2040 = vmatmul.msk.f32.vlgmr.msrb.gmra.mxu3 %vm440_vm0, %v352_v1  ;;  %v359_v0 = vld [vmem:[%s2366_s27 + $0x1b8] sm:$0xff] }
  0x96   : > { %2144 = vtanh.f32 %v1247_v3 }
  0x97   : > { %v2488_v4 = vpop.f32.mrf.mxu3 }
  0x98   : > { %v653_v5 = vpop.f32.mrf.mxu0 }
  0x99   : > { %v1054_v7 = vpop.f32.mrf.mxu1 }
  0x9a   : > { %v1055_v10 = vadd.f32 %v1054_v7, %v653_v5  ;;  %v396_v7 = vld [vmem:[%s2360_s23 + $0xc0] sm:$0xff] }
  0x9b   : > { %1945 = vmatmul.msk.f32.gmra.mxu0 %vm440_vm0, %v389_v6 }
  0x9c   : > { %v2145_v11 = vpop.eup %2144  ;;  %v1248_v12 = vadd.f32 %v2479_v61, %v1055_v10  ;;  %2009 = vmatmul.msk.f32.gmra.mxu1 %vm440_vm0, %v321_v8  ;;  %2041 = vmatmul.msk.f32.gmra.mxu3 %vm440_vm0, %v353_v9  ;;  %v328_v9 = vld [vmem:[%s2366_s27 + $0xc0] sm:$0xff] }
  0x9d   : > { %2056 = vmatmul.msk.f32.vlgmr.msra.gmra.mxu2 %vm440_vm0, %v2145_v11  ;;  %v360_v10 = vld [vmem:[%s2366_s27 + $0x1c0] sm:$0xff] }
  0x9e   : > { %2146 = vtanh.f32 %v1248_v12 }
  0x9f   : > { %v2498_v13 = vpop.f32.mrf.mxu3 }
  0xa0   : > { %v656_v14 = vpop.f32.mrf.mxu0 }
  0xa1   : > { %v1057_v16 = vpop.f32.mrf.mxu1 }
  0xa2   : > { %v1058_v19 = vadd.f32 %v1057_v16, %v656_v14 }
  0xa3   : > { %1946 = vmatmul.msk.f32.gmra.mxu0 %vm440_vm0, %v390_v15 }
  0xa4   : > { %v2147_v20 = vpop.eup %2146  ;;  %v1249_v21 = vadd.f32 %v2479_v61, %v1058_v19  ;;  %2010 = vmatmul.msk.f32.gmra.mxu1 %vm440_vm0, %v322_v17  ;;  %2042 = vmatmul.msk.f32.gmra.mxu3 %vm440_vm0, %v354_v18  ;;  %v397_v17 = vld [vmem:[%s2360_s23 + $0xc8] sm:$0xff] }
  0xa5   : > { %2057 = vmatmul.msk.f32.gmra.mxu2 %vm440_vm0, %v2147_v20  ;;  %v329_v19 = vld [vmem:[%s2366_s27 + $0xc8] sm:$0xff] }
  0xa6   : > { %2148 = vtanh.f32 %v1249_v21  ;;  %v361_v20 = vld [vmem:[%s2366_s27 + $0x1c8] sm:$0xff] }
  0xa7   : > { %v2508_v22 = vpop.f32.mrf.mxu3 }
  0xa8   : > { %v659_v23 = vpop.f32.mrf.mxu0 }
  0xa9   : > { %v1060_v25 = vpop.f32.mrf.mxu1 }
  0xaa   : > { %v1061_v28 = vadd.f32 %v1060_v25, %v659_v23 }
  0xab   : > { %1947 = vmatmul.msk.f32.gmra.mxu0 %vm440_vm0, %v391_v24 }
  0xac   : > { %v2149_v29 = vpop.eup %2148  ;;  %v1250_v30 = vadd.f32 %v2479_v61, %v1061_v28  ;;  %2011 = vmatmul.msk.f32.gmra.mxu1 %vm440_vm0, %v323_v26  ;;  %2043 = vmatmul.msk.f32.gmra.mxu3 %vm440_vm0, %v355_v27  ;;  %v398_v27 = vld [vmem:[%s2360_s23 + $0xd0] sm:$0xff] }
  0xad   : > { %2058 = vmatmul.msk.f32.gmra.mxu2 %vm440_vm0, %v2149_v29  ;;  %v330_v29 = vld [vmem:[%s2366_s27 + $0xd0] sm:$0xff] }
  0xae   : > { %2150 = vtanh.f32 %v1250_v30  ;;  %v362_v30 = vld [vmem:[%s2366_s27 + $0x1d0] sm:$0xff] }
  0xaf   : > { %v2518_v31 = vpop.f32.mrf.mxu3 }
  0xb0   : > { %v662_v32 = vpop.f32.mrf.mxu0 }
  0xb1   : > { %v1063_v34 = vpop.f32.mrf.mxu1 }
  0xb2   : > { %v1064_v37 = vadd.f32 %v1063_v34, %v662_v32 }
  0xb3   : > { %1948 = vmatmul.msk.f32.gmra.mxu0 %vm440_vm0, %v392_v33 }
  0xb4   : > { %v2151_v38 = vpop.eup %2150  ;;  %v1251_v39 = vadd.f32 %v2479_v61, %v1064_v37  ;;  %2012 = vmatmul.msk.f32.gmra.mxu1 %vm440_vm0, %v324_v35  ;;  %2044 = vmatmul.msk.f32.gmra.mxu3 %vm440_vm0, %v356_v36  ;;  %v399_v37 = vld [vmem:[%s2360_s23 + $0xd8] sm:$0xff] }
  0xb5   : > { %2059 = vmatmul.msk.f32.gmra.mxu2 %vm440_vm0, %v2151_v38 }
  0xb6   : > { %2152 = vtanh.f32 %v1251_v39  ;;  %v331_v39 = vld [vmem:[%s2366_s27 + $0xd8] sm:$0xff] }
  0xb7   : > { %v2528_v40 = vpop.f32.mrf.mxu3 }
  0xb8   : > { %v665_v41 = vpop.f32.mrf.mxu0 }
  0xb9   : > { %v1066_v43 = vpop.f32.mrf.mxu1 }
  0xba   : > { %v1067_v46 = vadd.f32 %v1066_v43, %v665_v41  ;;  %v363_v41 = vld [vmem:[%s2366_s27 + $0x1d8] sm:$0xff] }
  0xbb   : > { %1949 = vmatmul.msk.f32.gmra.mxu0 %vm440_vm0, %v393_v42 }
  0xbc   : > { %v2153_v47 = vpop.eup %2152  ;;  %v1252_v48 = vadd.f32 %v2479_v61, %v1067_v46  ;;  %2013 = vmatmul.msk.f32.gmra.mxu1 %vm440_vm0, %v325_v44  ;;  %2045 = vmatmul.msk.f32.gmra.mxu3 %vm440_vm0, %v357_v45 }
  0xbd   : > { %2060 = vmatmul.msk.f32.gmra.mxu2 %vm440_vm0, %v2153_v47  ;;  %v400_v47 = vld [vmem:[%s2360_s23 + $0xe0] sm:$0xff] }
  0xbe   : > { %2154 = vtanh.f32 %v1252_v48 }
  0xbf   : > { %v2538_v49 = vpop.f32.mrf.mxu3 }
  0xc0   : > { %v668_v50 = vpop.f32.mrf.mxu0 }
  0xc1   : > { %v1069_v52 = vpop.f32.mrf.mxu1 }
  0xc2   : > { %v1070_v55 = vadd.f32 %v1069_v52, %v668_v50  ;;  %v332_v50 = vld [vmem:[%s2366_s27 + $0xe0] sm:$0xff] }
  0xc3   : > { %1950 = vmatmul.msk.f32.gmra.mxu0 %vm440_vm0, %v394_v51  ;;  %v364_v51 = vld [vmem:[%s2366_s27 + $0x1e0] sm:$0xff] }
  0xc4   : > { %v2155_v56 = vpop.eup %2154  ;;  %v1253_v57 = vadd.f32 %v2479_v61, %v1070_v55  ;;  %2014 = vmatmul.msk.f32.gmra.mxu1 %vm440_vm0, %v326_v53  ;;  %2046 = vmatmul.msk.f32.gmra.mxu3 %vm440_vm0, %v358_v54 }
  0xc5   : > { %2061 = vmatmul.msk.f32.gmra.mxu2 %vm440_vm0, %v2155_v56 }
  0xc6   : > { %2156 = vtanh.f32 %v1253_v57  ;;  %v401_v57 = vld [vmem:[%s2360_s23 + $0xe8] sm:$0xff] }
  0xc7   : > { %v2548_v58 = vpop.f32.mrf.mxu3 }
  0xc8   : > { %v671_v59 = vpop.f32.mrf.mxu0 }
  0xc9   : > { %v1072_v62 = vpop.f32.mrf.mxu1 }
  0xca   : > { %v1073_v1 = vadd.f32 %v1072_v62, %v671_v59  ;;  %v365_v62 = vld [vmem:[%s2366_s27 + $0x1e8] sm:$0xff] }
  0xcb   : > { %1951 = vmatmul.msk.f32.gmra.mxu0 %vm440_vm0, %v395_v60  ;;  %v333_v60 = vld [vmem:[%s2366_s27 + $0xe8] sm:$0xff] }
  0xcc   : > { %v2157_v2 = vpop.eup %2156  ;;  %v1254_v3 = vadd.f32 %v2479_v61, %v1073_v1  ;;  %2015 = vmatmul.msk.f32.gmra.mxu1 %vm440_vm0, %v327_v63  ;;  %2047 = vmatmul.msk.f32.gmra.mxu3 %vm440_vm0, %v359_v0 }
  0xcd   : > { %2062 = vmatmul.msk.f32.gmra.mxu2 %vm440_vm0, %v2157_v2 }
  0xce   : > { %2158 = vtanh.f32 %v1254_v3 }
  0xcf   : > { %v2558_v5 = vpop.f32.mrf.mxu3 }
  0xd0   : > { %v674_v6 = vpop.f32.mrf.mxu0 }
  0xd1   : > { %v1075_v8 = vpop.f32.mrf.mxu1 }
  0xd2   : > { %v1076_v11 = vadd.f32 %v1075_v8, %v674_v6  ;;  %v402_v6 = vld [vmem:[%s2360_s23 + $0xf0] sm:$0xff] }
  0xd3   : > { %1952 = vmatmul.msk.f32.gmra.mxu0 %vm440_vm0, %v396_v7  ;;  %v334_v8 = vld [vmem:[%s2366_s27 + $0xf0] sm:$0xff] }
  0xd4   : > { %v2159_v12 = vpop.eup %2158  ;;  %v1255_v14 = vadd.f32 %v2479_v61, %v1076_v11  ;;  %2016 = vmatmul.msk.f32.gmra.mxu1 %vm440_vm0, %v328_v9  ;;  %2048 = vmatmul.msk.f32.gmra.mxu3 %vm440_vm0, %v360_v10  ;;  %v366_v9 = vld [vmem:[%s2366_s27 + $0x1f0] sm:$0xff] }
  0xd5   : > { %2063 = vmatmul.msk.f32.gmra.mxu2 %vm440_vm0, %v2159_v12 }
  0xd6   : > { %2160 = vtanh.f32 %v1255_v14 }
  0xd7   : > { %v2568_v15 = vpop.f32.mrf.mxu3 }
  0xd8   : > { %v677_v16 = vpop.f32.mrf.mxu0 }
  0xd9   : > { %v1078_v18 = vpop.f32.mrf.mxu1 }
  0xda   : > { %v1079_v21 = vadd.f32 %v1078_v18, %v677_v16 }
  0xdb   : > { %1953 = vmatmul.msk.f32.gmra.mxu0 %vm440_vm0, %v397_v17  ;;  %v403_v17 = vld [vmem:[%s2360_s23 + $0xf8] sm:$0xff] }
  0xdc   : > { %v2161_v23 = vpop.eup %2160  ;;  %v1256_v24 = vadd.f32 %v2479_v61, %v1079_v21  ;;  %2017 = vmatmul.msk.f32.gmra.mxu1 %vm440_vm0, %v329_v19  ;;  %2049 = vmatmul.msk.f32.gmra.mxu3 %vm440_vm0, %v361_v20  ;;  %v335_v19 = vld [vmem:[%s2366_s27 + $0xf8] sm:$0xff] }
  0xdd   : > { %2064 = vmatmul.msk.f32.gmra.mxu2 %vm440_vm0, %v2161_v23  ;;  %v367_v20 = vld [vmem:[%s2366_s27 + $0x1f8] sm:$0xff] }
  0xde   : > { %2162 = vtanh.f32 %v1256_v24 }
  0xdf   : > { %v2578_v25 = vpop.f32.mrf.mxu3 }
  0xe0   : > { %v680_v26 = vpop.f32.mrf.mxu0 }
  0xe1   : > { %v1081_v28 = vpop.f32.mrf.mxu1 }
  0xe2   : > { %v1082_v32 = vadd.f32 %v1081_v28, %v680_v26  ;;  %v404_v28 = vld [vmem:[%s2360_s23 + $0x100] sm:$0xff] }
  0xe3   : > { %1954 = vmatmul.msk.f32.gmra.mxu0 %vm440_vm0, %v398_v27 }
  0xe4   : > { %v2163_v33 = vpop.eup %2162  ;;  %v1257_v34 = vadd.f32 %v2479_v61, %v1082_v32  ;;  %2018 = vmatmul.msk.f32.gmra.mxu1 %vm440_vm0, %v330_v29  ;;  %2050 = vmatmul.msk.f32.gmra.mxu3 %vm440_vm0, %v362_v30  ;;  %v336_v30 = vld [vmem:[%s2366_s27 + $0x100] sm:$0xff] }
  0xe5   : > { %2065 = vmatmul.msk.f32.gmra.mxu2 %vm440_vm0, %v2163_v33 }
  0xe6   : > { %2164 = vtanh.f32 %v1257_v34 }
  0xe7   : > { %v2588_v35 = vpop.f32.mrf.mxu3 }
  0xe8   : > { %v683_v36 = vpop.f32.mrf.mxu0 }
  0xe9   : > { %v1084_v38 = vpop.f32.mrf.mxu1 }
  0xea   : > { %v1085_v42 = vadd.f32 %v1084_v38, %v683_v36 }
  0xeb   : > { %1955 = vmatmul.msk.f32.gmra.mxu0 %vm440_vm0, %v399_v37 }
  0xec   : > { %v2165_v43 = vpop.eup %2164  ;;  %v1258_v44 = vadd.f32 %v2479_v61, %v1085_v42  ;;  %2019 = vmatmul.msk.f32.gmra.mxu1 %vm440_vm0, %v331_v39  ;;  %2051 = vmatmul.msk.f32.gmra.mxu3 %vm440_vm0, %v363_v41  ;;  %v405_v39 = vld [vmem:[%s2360_s23 + $0x108] sm:$0xff] }
  0xed   : > { %2066 = vmatmul.msk.f32.gmra.mxu2 %vm440_vm0, %v2165_v43  ;;  %v337_v42 = vld [vmem:[%s2366_s27 + $0x108] sm:$0xff] }
  0xee   : > { %2166 = vtanh.f32 %v1258_v44 }
  0xef   : > { %v2598_v45 = vpop.f32.mrf.mxu3 }
  0xf0   : > { %v686_v46 = vpop.f32.mrf.mxu0 }
  0xf1   : > { %v1087_v48 = vpop.f32.mrf.mxu1 }
  0xf2   : > { %v1088_v52 = vadd.f32 %v1087_v48, %v686_v46 }
  0xf3   : > { %1956 = vmatmul.msk.f32.gmra.mxu0 %vm440_vm0, %v400_v47 }
  0xf4   : > { %v2167_v53 = vpop.eup %2166  ;;  %v1259_v54 = vadd.f32 %v2479_v61, %v1088_v52  ;;  %2020 = vmatmul.msk.f32.gmra.mxu1 %vm440_vm0, %v332_v50  ;;  %2052 = vmatmul.msk.f32.gmra.mxu3 %vm440_vm0, %v364_v51 }
  0xf5   : > { %2067 = vmatmul.msk.f32.gmra.mxu2 %vm440_vm0, %v2167_v53  ;;  %v406_v53 = vld [vmem:[%s2360_s23 + $0x110] sm:$0xff] }
  0xf6   : > { %2168 = vtanh.f32 %v1259_v54 }
  0xf7   : > { %v2608_v55 = vpop.f32.mrf.mxu3 }
  0xf8   : > { %v689_v56 = vpop.f32.mrf.mxu0 }
  0xf9   : > { %v1090_v59 = vpop.f32.mrf.mxu1 }
  0xfa   : > { %v1091_v63 = vadd.f32 %v1090_v59, %v689_v56 }
  0xfb   : > { %1957 = vmatmul.msk.f32.gmra.mxu0 %vm440_vm0, %v401_v57  ;;  %v338_v57 = vld [vmem:[%s2366_s27 + $0x110] sm:$0xff] }
  0xfc   : > { %v2169_v0 = vpop.eup %2168  ;;  %v1260_v1 = vadd.f32 %v2479_v61, %v1091_v63  ;;  %2021 = vmatmul.msk.f32.gmra.mxu1 %vm440_vm0, %v333_v60  ;;  %2053 = vmatmul.msk.f32.gmra.mxu3 %vm440_vm0, %v365_v62 }
  0xfd   : > { %2068 = vmatmul.msk.f32.gmra.mxu2 %vm440_vm0, %v2169_v0 }
  0xfe   : > { %2170 = vtanh.f32 %v1260_v1 }
  0xff   : > { %v2618_v2 = vpop.f32.mrf.mxu3 }
 0x100   : > { %v692_v3 = vpop.f32.mrf.mxu0 }
 0x101   : > { %v1093_v7 = vpop.f32.mrf.mxu1 }
 0x102   : > { %v1094_v10 = vadd.f32 %v1093_v7, %v692_v3  ;;  %v407_v7 = vld [vmem:[%s2360_s23 + $0x118] sm:$0xff] }
 0x103   : > { %1958 = vmatmul.msk.f32.gmra.mxu0 %vm440_vm0, %v402_v6 }
 0x104   : > { %v2171_v11 = vpop.eup %2170  ;;  %v1261_v12 = vadd.f32 %v2479_v61, %v1094_v10  ;;  %2022 = vmatmul.msk.f32.gmra.mxu1 %vm440_vm0, %v334_v8  ;;  %2054 = vmatmul.msk.f32.gmra.mxu3 %vm440_vm0, %v366_v9  ;;  %v339_v10 = vld [vmem:[%s2366_s27 + $0x118] sm:$0xff] }
 0x105   : > { %2069 = vmatmul.msk.f32.gmra.mxu2 %vm440_vm0, %v2171_v11 }
 0x106   : > { %2172 = vtanh.f32 %v1261_v12 }
 0x107   : > { %v2628_v14 = vpop.f32.mrf.mxu3 }
 0x108   : > { %v695_v16 = vpop.f32.mrf.mxu0 }
 0x109   : > { %v1096_v18 = vpop.f32.mrf.mxu1 }
 0x10a   : > { %v1097_v21 = vadd.f32 %v1096_v18, %v695_v16 }
 0x10b   : > { %1959 = vmatmul.msk.f32.gmra.mxu0 %vm440_vm0, %v403_v17 }
 0x10c   : > { %v2173_v23 = vpop.eup %2172  ;;  %v1262_v24 = vadd.f32 %v2479_v61, %v1097_v21  ;;  %2023 = vmatmul.msk.f32.gmra.mxu1 %vm440_vm0, %v335_v19  ;;  %2055 = vmatmul.msk.f32.gmra.mxu3 %vm440_vm0, %v367_v20 }
 0x10d   : > { %2070 = vmatmul.msk.f32.gmra.mxu2 %vm440_vm0, %v2173_v23  ;;  %v408_v23 = vld [vmem:[%s2360_s23 + $0x120] sm:$0xff] }
 0x10e   : > { %2174 = vtanh.f32 %v1262_v24 }
 0x10f   : > { %v2638_v26 = vpop.f32.mrf.mxu3 }
 0x110   : > { %v698_v27 = vpop.f32.mrf.mxu0 }
 0x111   : > { %v1099_v29 = vpop.f32.mrf.mxu1 }
 0x112   : > { %v1100_v32 = vadd.f32 %v1099_v29, %v698_v27 }
 0x113   : > { %1960 = vmatmul.msk.f32.gmra.mxu0 %vm440_vm0, %v404_v28  ;;  %v340_v28 = vld [vmem:[%s2366_s27 + $0x120] sm:$0xff] }
 0x114   : > { %v2175_v33 = vpop.eup %2174  ;;  %v1263_v34 = vadd.f32 %v2479_v61, %v1100_v32  ;;  %2024 = vmatmul.msk.f32.gmra.mxu1 %vm440_vm0, %v336_v30 }
 0x115   : > { %2071 = vmatmul.msk.f32.gmra.mxu2 %vm440_vm0, %v2175_v33 }
 0x116   : > { %2176 = vtanh.f32 %v1263_v34 }
 0x117   : > { %v1195_v36 = vpop.f32.mrf.mxu3 }
 0x118   : > { %v1196_v37 = vadd.f32 %v1195_v36, %v2488_v4  ;;  %v701_v38 = vpop.f32.mrf.mxu0  ;;  %v2657_v4 = vld [vmem:[%s3022_s6] ss:$0 sm:$0xff] }
 0x119   : > { %v1102_v41 = vpop.f32.mrf.mxu1 }
 0x11a   : > { %v1295_v43 = vadd.f32 %v2479_v61, %v1196_v37  ;;  %v1103_v44 = vadd.f32 %v1102_v41, %v701_v38 }
 0x11b   : > { %1961 = vmatmul.msk.f32.gmra.mxu0 %vm440_vm0, %v405_v39  ;;  %v409_v39 = vld [vmem:[%s2360_s23 + $0x128] sm:$0xff] }
 0x11c   : > { %v2177_v46 = vpop.eup %2176  ;;  %2178 = vtanh.f32 %v1295_v43  ;;  %v1264_v47 = vadd.f32 %v2479_v61, %v1103_v44  ;;  %2025 = vmatmul.msk.f32.gmra.mxu1 %vm440_vm0, %v337_v42  ;;  %v341_v43 = vld [vmem:[%s2366_s27 + $0x128] sm:$0xff] }
 0x11d   : > { %2072 = vmatmul.msk.f32.gmra.mxu2 %vm440_vm0, %v2177_v46 }
 0x11e   : > { %2180 = vtanh.f32 %v1264_v47 }
 0x11f   : > { %v1198_v48 = vpop.f32.mrf.mxu3 }
 0x120   : > { %v1199_v50 = vadd.f32 %v1198_v48, %v2498_v13  ;;  %v1592_v51 = vpop.f32.mrf.mxu2  ;;  %v704_v52 = vpop.f32.mrf.mxu0 }
 0x121   : > { %v1593_v54 = vadd.f32 %v2657_v4, %v1592_v51  ;;  %v1105_v56 = vpop.f32.mrf.mxu1 }
 0x122   : > { %v2179_v59 = vpop.eup %2178  ;;  %v1296_v60 = vadd.f32 %v2479_v61, %v1199_v50  ;;  %v1106_v62 = vadd.f32 %v1105_v56, %v704_v52 }
 0x123   : > { %1785 = vst.msk [vmem:[%s2664_s19] sm:$0xff] %vm1784_vm1, %v1593_v54  ;;  %2104 = vmatmul.msk.f32.vlgmr.msra.gmra.mxu3 %vm440_vm0, %v2179_v59  ;;  %1962 = vmatmul.msk.f32.gmra.mxu0 %vm440_vm0, %v406_v53  ;;  %v410_v54 = vld [vmem:[%s2360_s23 + $0x130] sm:$0xff] }
 0x124   : > { %v2181_v13 = vpop.eup %2180  ;;  %2182 = vtanh.f32 %v1296_v60  ;;  %v1265_v63 = vadd.f32 %v2479_v61, %v1106_v62  ;;  %2026 = vmatmul.msk.f32.gmra.mxu1 %vm440_vm0, %v338_v57  ;;  %v342_v59 = vld [vmem:[%s2366_s27 + $0x130] sm:$0xff] }
 0x125   : > { %2073 = vmatmul.msk.f32.gmra.mxu2 %vm440_vm0, %v2181_v13 }
 0x126   : > { %2184 = vtanh.f32 %v1265_v63 }
 0x127   : > { %v1201_v0 = vpop.f32.mrf.mxu3 }
 0x128   : > { %v1202_v1 = vadd.f32 %v1201_v0, %v2508_v22  ;;  %v1595_v3 = vpop.f32.mrf.mxu2  ;;  %v707_v6 = vpop.f32.mrf.mxu0 }
 0x129   : > { %v1596_v8 = vadd.f32 %v2657_v4, %v1595_v3  ;;  %v1108_v9 = vpop.f32.mrf.mxu1 }
 0x12a   : > { %v2183_v11 = vpop.eup %2182  ;;  %v1297_v12 = vadd.f32 %v2479_v61, %v1202_v1  ;;  %v1109_v16 = vadd.f32 %v1108_v9, %v707_v6 }
 0x12b   : > { %1786 = vst.msk [vmem:[%s2664_s19 + $0x8] sm:$0xff] %vm1784_vm1, %v1596_v8  ;;  %2105 = vmatmul.msk.f32.gmra.mxu3 %vm440_vm0, %v2183_v11  ;;  %1963 = vmatmul.msk.f32.gmra.mxu0 %vm440_vm0, %v407_v7  ;;  %v411_v7 = vld [vmem:[%s2360_s23 + $0x138] sm:$0xff] }
 0x12c   : > { %v2185_v22 = vpop.eup %2184  ;;  %2186 = vtanh.f32 %v1297_v12  ;;  %v1266_v17 = vadd.f32 %v2479_v61, %v1109_v16  ;;  %2027 = vmatmul.msk.f32.gmra.mxu1 %vm440_vm0, %v339_v10  ;;  %v343_v10 = vld [vmem:[%s2366_s27 + $0x138] sm:$0xff] }
 0x12d   : > { %2074 = vmatmul.msk.f32.gmra.mxu2 %vm440_vm0, %v2185_v22 }
 0x12e   : > { %2188 = vtanh.f32 %v1266_v17 }
 0x12f   : > { %v1204_v18 = vpop.f32.mrf.mxu3 }
 0x130   : > { %v1205_v19 = vadd.f32 %v1204_v18, %v2518_v31  ;;  %v1598_v20 = vpop.f32.mrf.mxu2  ;;  %v710_v21 = vpop.f32.mrf.mxu0 }
 0x131   : > { %v1599_v24 = vadd.f32 %v2657_v4, %v1598_v20  ;;  %v1111_v27 = vpop.f32.mrf.mxu1 }
 0x132   : > { %v2187_v29 = vpop.eup %2186  ;;  %v1298_v30 = vadd.f32 %v2479_v61, %v1205_v19  ;;  %v1112_v32 = vadd.f32 %v1111_v27, %v710_v21  ;;  %v412_v21 = vld [vmem:[%s2360_s23 + $0x140] sm:$0xff] }
 0x133   : > { %1787 = vst.msk [vmem:[%s2664_s19 + $0x10] sm:$0xff] %vm1784_vm1, %v1599_v24  ;;  %2106 = vmatmul.msk.f32.gmra.mxu3 %vm440_vm0, %v2187_v29  ;;  %1964 = vmatmul.msk.f32.gmra.mxu0 %vm440_vm0, %v408_v23  ;;  %v344_v27 = vld [vmem:[%s2366_s27 + $0x140] sm:$0xff] }
 0x134   : > { %v2189_v31 = vpop.eup %2188  ;;  %2190 = vtanh.f32 %v1298_v30  ;;  %v1267_v33 = vadd.f32 %v2479_v61, %v1112_v32  ;;  %2028 = vmatmul.msk.f32.gmra.mxu1 %vm440_vm0, %v340_v28 }
 0x135   : > { %2075 = vmatmul.msk.f32.gmra.mxu2 %vm440_vm0, %v2189_v31 }
 0x136   : > { %2192 = vtanh.f32 %v1267_v33 }
 0x137   : > { %v1207_v34 = vpop.f32.mrf.mxu3 }
 0x138   : > { %v1208_v36 = vadd.f32 %v1207_v34, %v2528_v40  ;;  %v1601_v37 = vpop.f32.mrf.mxu2  ;;  %v713_v38 = vpop.f32.mrf.mxu0 }
 0x139   : > { %v1602_v41 = vadd.f32 %v2657_v4, %v1601_v37  ;;  %v1114_v42 = vpop.f32.mrf.mxu1  ;;  %v413_v37 = vld [vmem:[%s2360_s23 + $0x148] sm:$0xff] }
 0x13a   : > { %v2191_v44 = vpop.eup %2190  ;;  %v1299_v46 = vadd.f32 %v2479_v61, %v1208_v36  ;;  %v1115_v47 = vadd.f32 %v1114_v42, %v713_v38 }
 0x13b   : > { %1788 = vst.msk [vmem:[%s2664_s19 + $0x18] sm:$0xff] %vm1784_vm1, %v1602_v41  ;;  %2107 = vmatmul.msk.f32.gmra.mxu3 %vm440_vm0, %v2191_v44  ;;  %1965 = vmatmul.msk.f32.gmra.mxu0 %vm440_vm0, %v409_v39  ;;  %v345_v41 = vld [vmem:[%s2366_s27 + $0x148] sm:$0xff] }
 0x13c   : > { %v2193_v40 = vpop.eup %2192  ;;  %2194 = vtanh.f32 %v1299_v46  ;;  %v1268_v48 = vadd.f32 %v2479_v61, %v1115_v47  ;;  %2029 = vmatmul.msk.f32.gmra.mxu1 %vm440_vm0, %v341_v43 }
 0x13d   : > { %2076 = vmatmul.msk.f32.gmra.mxu2 %vm440_vm0, %v2193_v40 }
 0x13e   : > { %2196 = vtanh.f32 %v1268_v48 }
 0x13f   : > { %v1210_v50 = vpop.f32.mrf.mxu3 }
 0x140   : > { %v1211_v51 = vadd.f32 %v1210_v50, %v2538_v49  ;;  %v1604_v52 = vpop.f32.mrf.mxu2  ;;  %v716_v53 = vpop.f32.mrf.mxu0 }
 0x141   : > { %v1605_v56 = vadd.f32 %v2657_v4, %v1604_v52  ;;  %v1117_v57 = vpop.f32.mrf.mxu1 }
 0x142   : > { %v2195_v60 = vpop.eup %2194  ;;  %v1300_v62 = vadd.f32 %v2479_v61, %v1211_v51  ;;  %v1118_v13 = vadd.f32 %v1117_v57, %v716_v53  ;;  %v414_v51 = vld [vmem:[%s2360_s23 + $0x150] sm:$0xff] }
 0x143   : > { %1789 = vst.msk [vmem:[%s2664_s19 + $0x20] sm:$0xff] %vm1784_vm1, %v1605_v56  ;;  %2108 = vmatmul.msk.f32.gmra.mxu3 %vm440_vm0, %v2195_v60  ;;  %1966 = vmatmul.msk.f32.gmra.mxu0 %vm440_vm0, %v410_v54  ;;  %v346_v54 = vld [vmem:[%s2366_s27 + $0x150] sm:$0xff] }
 0x144   : > { %v2197_v49 = vpop.eup %2196  ;;  %2198 = vtanh.f32 %v1300_v62  ;;  %v1269_v63 = vadd.f32 %v2479_v61, %v1118_v13  ;;  %2030 = vmatmul.msk.f32.gmra.mxu1 %vm440_vm0, %v342_v59 }
 0x145   : > { %2077 = vmatmul.msk.f32.gmra.mxu2 %vm440_vm0, %v2197_v49 }
 0x146   : > { %2200 = vtanh.f32 %v1269_v63 }
 0x147   : > { %v1213_v0 = vpop.f32.mrf.mxu3 }
 0x148   : > { %v1214_v1 = vadd.f32 %v1213_v0, %v2548_v58  ;;  %v1607_v3 = vpop.f32.mrf.mxu2  ;;  %v719_v6 = vpop.f32.mrf.mxu0  ;;  %v415_v0 = vld [vmem:[%s2360_s23 + $0x158] sm:$0xff] }
 0x149   : > { %v1608_v8 = vadd.f32 %v2657_v4, %v1607_v3  ;;  %v1120_v9 = vpop.f32.mrf.mxu1 }
 0x14a   : > { %v2199_v11 = vpop.eup %2198  ;;  %v1301_v12 = vadd.f32 %v2479_v61, %v1214_v1  ;;  %v1121_v16 = vadd.f32 %v1120_v9, %v719_v6  ;;  %v347_v6 = vld [vmem:[%s2366_s27 + $0x158] sm:$0xff] }
 0x14b   : > { %1790 = vst.msk [vmem:[%s2664_s19 + $0x28] sm:$0xff] %vm1784_vm1, %v1608_v8  ;;  %2109 = vmatmul.msk.f32.gmra.mxu3 %vm440_vm0, %v2199_v11  ;;  %1967 = vmatmul.msk.f32.gmra.mxu0 %vm440_vm0, %v411_v7 }
 0x14c   : > { %v2201_v58 = vpop.eup %2200  ;;  %2202 = vtanh.f32 %v1301_v12  ;;  %v1270_v22 = vadd.f32 %v2479_v61, %v1121_v16  ;;  %2031 = vmatmul.msk.f32.gmra.mxu1 %vm440_vm0, %v343_v10 }
 0x14d   : > { %2078 = vmatmul.msk.f32.gmra.mxu2 %vm440_vm0, %v2201_v58 }
 0x14e   : > { %2204 = vtanh.f32 %v1270_v22  ;;  %v416_v22 = vld [vmem:[%s2360_s23 + $0x160] sm:$0xff] }
 0x14f   : > { %v1216_v17 = vpop.f32.mrf.mxu3 }
 0x150   : > { %v1217_v18 = vadd.f32 %v1216_v17, %v2558_v5  ;;  %v1610_v19 = vpop.f32.mrf.mxu2  ;;  %v722_v20 = vpop.f32.mrf.mxu0 }
 0x151   : > { %v1611_v23 = vadd.f32 %v2657_v4, %v1610_v19  ;;  %v1123_v24 = vpop.f32.mrf.mxu1  ;;  %v348_v19 = vld [vmem:[%s2366_s27 + $0x160] sm:$0xff] }
 0x152   : > { %v2203_v28 = vpop.eup %2202  ;;  %v1302_v29 = vadd.f32 %v2479_v61, %v1217_v18  ;;  %v1124_v30 = vadd.f32 %v1123_v24, %v722_v20 }
 0x153   : > { %1791 = vst.msk [vmem:[%s2664_s19 + $0x30] sm:$0xff] %vm1784_vm1, %v1611_v23  ;;  %2110 = vmatmul.msk.f32.gmra.mxu3 %vm440_vm0, %v2203_v28  ;;  %1968 = vmatmul.msk.f32.gmra.mxu0 %vm440_vm0, %v412_v21 }
 0x154   : > { %v2205_v5 = vpop.eup %2204  ;;  %2206 = vtanh.f32 %v1302_v29  ;;  %v1271_v32 = vadd.f32 %v2479_v61, %v1124_v30  ;;  %2032 = vmatmul.msk.f32.gmra.mxu1 %vm440_vm0, %v344_v27 }
 0x155   : > { %2079 = vmatmul.msk.f32.gmra.mxu2 %vm440_vm0, %v2205_v5  ;;  %v417_v5 = vld [vmem:[%s2360_s23 + $0x168] sm:$0xff] }
 0x156   : > { %2208 = vtanh.f32 %v1271_v32 }
 0x157   : > { %v1219_v31 = vpop.f32.mrf.mxu3 }
 0x158   : > { %v1220_v33 = vadd.f32 %v1219_v31, %v2568_v15  ;;  %v1613_v34 = vpop.f32.mrf.mxu2  ;;  %v725_v36 = vpop.f32.mrf.mxu0 }
 0x159   : > { %v1614_v38 = vadd.f32 %v2657_v4, %v1613_v34  ;;  %v1126_v39 = vpop.f32.mrf.mxu1 }
 0x15a   : > { %v2207_v42 = vpop.eup %2206  ;;  %v1303_v43 = vadd.f32 %v2479_v61, %v1220_v33  ;;  %v1127_v44 = vadd.f32 %v1126_v39, %v725_v36  ;;  %v349_v33 = vld [vmem:[%s2366_s27 + $0x168] sm:$0xff] }
 0x15b   : > { %1792 = vst.msk [vmem:[%s2664_s19 + $0x38] sm:$0xff] %vm1784_vm1, %v1614_v38  ;;  %2111 = vmatmul.msk.f32.gmra.mxu3 %vm440_vm0, %v2207_v42  ;;  %1969 = vmatmul.msk.f32.gmra.mxu0 %vm440_vm0, %v413_v37 }
 0x15c   : > { %v2209_v15 = vpop.eup %2208  ;;  %2210 = vtanh.f32 %v1303_v43  ;;  %v1272_v46 = vadd.f32 %v2479_v61, %v1127_v44  ;;  %2033 = vmatmul.msk.f32.gmra.mxu1 %vm440_vm0, %v345_v41  ;;  %v418_v44 = vld [vmem:[%s2360_s23 + $0x170] sm:$0xff] }
 0x15d   : > { %2080 = vmatmul.msk.f32.gmra.mxu2 %vm440_vm0, %v2209_v15 }
 0x15e   : > { %2212 = vtanh.f32 %v1272_v46 }
 0x15f   : > { %v1222_v47 = vpop.f32.mrf.mxu3 }
 0x160   : > { %v1223_v40 = vadd.f32 %v1222_v47, %v2578_v25  ;;  %v1616_v48 = vpop.f32.mrf.mxu2  ;;  %v728_v50 = vpop.f32.mrf.mxu0  ;;  %v350_v47 = vld [vmem:[%s2366_s27 + $0x170] sm:$0xff] }
 0x161   : > { %v1617_v52 = vadd.f32 %v2657_v4, %v1616_v48  ;;  %v1129_v53 = vpop.f32.mrf.mxu1 }
 0x162   : > { %v2211_v56 = vpop.eup %2210  ;;  %v1304_v57 = vadd.f32 %v2479_v61, %v1223_v40  ;;  %v1130_v59 = vadd.f32 %v1129_v53, %v728_v50 }
 0x163   : > { %1793 = vst.msk [vmem:[%s2664_s19 + $0x40] sm:$0xff] %vm1784_vm1, %v1617_v52  ;;  %2112 = vmatmul.msk.f32.gmra.mxu3 %vm440_vm0, %v2211_v56  ;;  %1970 = vmatmul.msk.f32.gmra.mxu0 %vm440_vm0, %v414_v51 }
 0x164   : > { %v2213_v25 = vpop.eup %2212  ;;  %2214 = vtanh.f32 %v1304_v57  ;;  %v1273_v60 = vadd.f32 %v2479_v61, %v1130_v59  ;;  %2034 = vmatmul.msk.f32.gmra.mxu1 %vm440_vm0, %v346_v54  ;;  %v419_v57 = vld [vmem:[%s2360_s23 + $0x178] sm:$0xff] }
 0x165   : > { %2081 = vmatmul.msk.f32.gmra.mxu2 %vm440_vm0, %v2213_v25 }
 0x166   : > { %2216 = vtanh.f32 %v1273_v60  ;;  %v351_v60 = vld [vmem:[%s2366_s27 + $0x178] sm:$0xff] }
 0x167   : > { %v1225_v62 = vpop.f32.mrf.mxu3 }
 0x168   : > { %v1226_v13 = vadd.f32 %v1225_v62, %v2588_v35  ;;  %v1619_v49 = vpop.f32.mrf.mxu2  ;;  %v731_v63 = vpop.f32.mrf.mxu0 }
 0x169   : > { %v1620_v1 = vadd.f32 %v2657_v4, %v1619_v49  ;;  %v1132_v3 = vpop.f32.mrf.mxu1 }
 0x16a   : > { %v2215_v7 = vpop.eup %2214  ;;  %v1305_v8 = vadd.f32 %v2479_v61, %v1226_v13  ;;  %v1133_v9 = vadd.f32 %v1132_v3, %v731_v63 }
 0x16b   : > { %1794 = vst.msk [vmem:[%s2664_s19 + $0x48] sm:$0xff] %vm1784_vm1, %v1620_v1  ;;  %2113 = vmatmul.msk.f32.gmra.mxu3 %vm440_vm0, %v2215_v7  ;;  %1971 = vmatmul.msk.f32.gmra.mxu0 %vm440_vm0, %v415_v0 }
 0x16c   : > { %v2217_v35 = vpop.eup %2216  ;;  %2218 = vtanh.f32 %v1305_v8  ;;  %v1274_v10 = vadd.f32 %v2479_v61, %v1133_v9  ;;  %2035 = vmatmul.msk.f32.gmra.mxu1 %vm440_vm0, %v347_v6 }
 0x16d   : > { %2082 = vmatmul.msk.f32.gmra.mxu2 %vm440_vm0, %v2217_v35 }
 0x16e   : > { %2220 = vtanh.f32 %v1274_v10 }
 0x16f   : > { %v1228_v11 = vpop.f32.mrf.mxu3 }
 0x170   : > { %v1229_v12 = vadd.f32 %v1228_v11, %v2598_v45  ;;  %v1622_v16 = vpop.f32.mrf.mxu2  ;;  %v734_v58 = vpop.f32.mrf.mxu0 }
 0x171   : > { %v1623_v17 = vadd.f32 %v2657_v4, %v1622_v16  ;;  %v1135_v18 = vpop.f32.mrf.mxu1 }
 0x172   : > { %v2219_v20 = vpop.eup %2218  ;;  %v1306_v21 = vadd.f32 %v2479_v61, %v1229_v12  ;;  %v1136_v23 = vadd.f32 %v1135_v18, %v734_v58 }
 0x173   : > { %1795 = vst.msk [vmem:[%s2664_s19 + $0x50] sm:$0xff] %vm1784_vm1, %v1623_v17  ;;  %2114 = vmatmul.msk.f32.gmra.mxu3 %vm440_vm0, %v2219_v20  ;;  %1972 = vmatmul.msk.f32.gmra.mxu0 %vm440_vm0, %v416_v22 }
 0x174   : > { %v2221_v45 = vpop.eup %2220  ;;  %2222 = vtanh.f32 %v1306_v21  ;;  %v1275_v24 = vadd.f32 %v2479_v61, %v1136_v23  ;;  %2036 = vmatmul.msk.f32.gmra.mxu1 %vm440_vm0, %v348_v19 }
 0x175   : > { %2083 = vmatmul.msk.f32.gmra.mxu2 %vm440_vm0, %v2221_v45 }
 0x176   : > { %2224 = vtanh.f32 %v1275_v24 }
 0x177   : > { %v1231_v27 = vpop.f32.mrf.mxu3 }
 0x178   : > { %v1232_v28 = vadd.f32 %v1231_v27, %v2608_v55  ;;  %v1625_v29 = vpop.f32.mrf.mxu2  ;;  %v737_v30 = vpop.f32.mrf.mxu0 }
 0x179   : > { %v1626_v32 = vadd.f32 %v2657_v4, %v1625_v29  ;;  %v1138_v31 = vpop.f32.mrf.mxu1 }
 0x17a   : > { %v2223_v34 = vpop.eup %2222  ;;  %v1307_v36 = vadd.f32 %v2479_v61, %v1232_v28  ;;  %v1139_v37 = vadd.f32 %v1138_v31, %v737_v30 }
 0x17b   : > { %1796 = vst.msk [vmem:[%s2664_s19 + $0x58] sm:$0xff] %vm1784_vm1, %v1626_v32  ;;  %2115 = vmatmul.msk.f32.gmra.mxu3 %vm440_vm0, %v2223_v34  ;;  %1973 = vmatmul.msk.f32.gmra.mxu0 %vm440_vm0, %v417_v5 }
 0x17c   : > { %v2225_v55 = vpop.eup %2224  ;;  %2226 = vtanh.f32 %v1307_v36  ;;  %v1276_v38 = vadd.f32 %v2479_v61, %v1139_v37  ;;  %2037 = vmatmul.msk.f32.gmra.mxu1 %vm440_vm0, %v349_v33 }
 0x17d   : > { %2084 = vmatmul.msk.f32.gmra.mxu2 %vm440_vm0, %v2225_v55 }
 0x17e   : > { %2228 = vtanh.f32 %v1276_v38 }
 0x17f   : > { %v1234_v39 = vpop.f32.mrf.mxu3 }
 0x180   : > { %v1235_v41 = vadd.f32 %v1234_v39, %v2618_v2  ;;  %v1628_v42 = vpop.f32.mrf.mxu2  ;;  %v740_v43 = vpop.f32.mrf.mxu0 }
 0x181   : > { %v1629_v15 = vadd.f32 %v2657_v4, %v1628_v42  ;;  %v1141_v46 = vpop.f32.mrf.mxu1 }
 0x182   : > { %v2227_v40 = vpop.eup %2226  ;;  %v1308_v48 = vadd.f32 %v2479_v61, %v1235_v41  ;;  %v1142_v50 = vadd.f32 %v1141_v46, %v740_v43 }
 0x183   : > { %1797 = vst.msk [vmem:[%s2664_s19 + $0x60] sm:$0xff] %vm1784_vm1, %v1629_v15  ;;  %2116 = vmatmul.msk.f32.gmra.mxu3 %vm440_vm0, %v2227_v40  ;;  %1974 = vmatmul.msk.f32.gmra.mxu0 %vm440_vm0, %v418_v44 }
 0x184   : > { %v2229_v2 = vpop.eup %2228  ;;  %2230 = vtanh.f32 %v1308_v48  ;;  %v1277_v51 = vadd.f32 %v2479_v61, %v1142_v50  ;;  %2038 = vmatmul.msk.f32.gmra.mxu1 %vm440_vm0, %v350_v47  ;;  %v2828_v61 = vld [vmem:[%s3020_s4] ss:$0 sm:$0xff] }
 0x185   : > { %2085 = vmatmul.msk.f32.gmra.mxu2 %vm440_vm0, %v2229_v2 }
 0x186   : > { %2232 = vtanh.f32 %v1277_v51 }
 0x187   : > { %v1237_v52 = vpop.f32.mrf.mxu3 }
 0x188   : > { %v1238_v53 = vadd.f32 %v1237_v52, %v2628_v14  ;;  %v1631_v54 = vpop.f32.mrf.mxu2  ;;  %v743_v56 = vpop.f32.mrf.mxu0 }
 0x189   : > { %v1632_v59 = vadd.f32 %v2657_v4, %v1631_v54  ;;  %v1144_v25 = vpop.f32.mrf.mxu1 }
 0x18a   : > { %v2231_v62 = vpop.eup %2230  ;;  %v1309_v13 = vadd.f32 %v2828_v61, %v1238_v53  ;;  %v1145_v49 = vadd.f32 %v1144_v25, %v743_v56 }
 0x18b   : > { %1798 = vst.msk [vmem:[%s2664_s19 + $0x68] sm:$0xff] %vm1784_vm1, %v1632_v59  ;;  %2117 = vmatmul.msk.f32.gmra.mxu3 %vm440_vm0, %v2231_v62  ;;  %1975 = vmatmul.msk.f32.gmra.mxu0 %vm440_vm0, %v419_v57 }
 0x18c   : > { %v2233_v14 = vpop.eup %2232  ;;  %2234 = vtanh.f32 %v1309_v13  ;;  %v1278_v63 = vadd.f32 %v2828_v61, %v1145_v49  ;;  %2039 = vmatmul.msk.f32.gmra.mxu1 %vm440_vm0, %v351_v60 }
 0x18d   : > { %2086 = vmatmul.msk.f32.gmra.mxu2 %vm440_vm0, %v2233_v14 }
 0x18e   : > { %2236 = vtanh.f32 %v1278_v63 }
 0x18f   : > { %v1240_v0 = vpop.f32.mrf.mxu3 }
 0x190   : > { %v1241_v1 = vadd.f32 %v1240_v0, %v2638_v26  ;;  %v1634_v3 = vpop.f32.mrf.mxu2  ;;  %v746_v6 = vpop.f32.mrf.mxu0 }
 0x191   : > { %v1635_v7 = vadd.f32 %v2657_v4, %v1634_v3  ;;  %v1147_v8 = vpop.f32.mrf.mxu1 }
 0x192   : > { %v2235_v9 = vpop.eup %2234  ;;  %v1310_v35 = vadd.f32 %v2828_v61, %v1241_v1  ;;  %v1148_v10 = vadd.f32 %v1147_v8, %v746_v6 }
 0x193   : > { %1799 = vst.msk [vmem:[%s2664_s19 + $0x70] sm:$0xff] %vm1784_vm1, %v1635_v7  ;;  %2118 = vmatmul.msk.f32.gmra.mxu3 %vm440_vm0, %v2235_v9 }
 0x194   : > { %v2237_v11 = vpop.eup %2236  ;;  %2238 = vtanh.f32 %v1310_v35  ;;  %v1279_v12 = vadd.f32 %v2828_v61, %v1148_v10 }
 0x195   : > { %2087 = vmatmul.msk.f32.gmra.mxu2 %vm440_vm0, %v2237_v11 }
 0x196   : > { %2240 = vtanh.f32 %v1279_v12 }
 0x198   : > { %v1637_v26 = vpop.f32.mrf.mxu2  ;;  %v749_v16 = vpop.f32.mrf.mxu0 }
 0x199   : > { %v1638_v58 = vadd.f32 %v2657_v4, %v1637_v26  ;;  %v1150_v22 = vpop.f32.mrf.mxu1 }
 0x19a   : > { %v2239_v17 = vpop.eup %2238  ;;  %v1151_v18 = vadd.f32 %v1150_v22, %v749_v16 }
 0x19b   : > { %1800 = vst.msk [vmem:[%s2664_s19 + $0x78] sm:$0xff] %vm1784_vm1, %v1638_v58  ;;  %2119 = vmatmul.msk.f32.gmra.mxu3 %vm440_vm0, %v2239_v17 }
 0x19c   : > { %v2241_v19 = vpop.eup %2240  ;;  %v1280_v20 = vadd.f32 %v2828_v61, %v1151_v18 }
 0x19d   : > { %2088 = vmatmul.msk.f32.gmra.mxu2 %vm440_vm0, %v2241_v19 }
 0x19e   : > { %2242 = vtanh.f32 %v1280_v20 }
 0x1a0   : > { %v1640_v21 = vpop.f32.mrf.mxu2  ;;  %v752_v23 = vpop.f32.mrf.mxu0 }
 0x1a1   : > { %v1641_v45 = vadd.f32 %v2657_v4, %v1640_v21  ;;  %v1153_v24 = vpop.f32.mrf.mxu1 }
 0x1a2   : > { %v1154_v27 = vadd.f32 %v1153_v24, %v752_v23 }
 0x1a3   : > { %1801 = vst.msk [vmem:[%s2664_s19 + $0x80] sm:$0xff] %vm1784_vm1, %v1641_v45 }
 0x1a4   : > { %v2243_v28 = vpop.eup %2242  ;;  %v1281_v29 = vadd.f32 %v2828_v61, %v1154_v27 }
 0x1a5   : > { %2089 = vmatmul.msk.f32.gmra.mxu2 %vm440_vm0, %v2243_v28 }
 0x1a6   : > { %2244 = vtanh.f32 %v1281_v29  ;;  %v1736_v30 = vpop.f32.mrf.mxu3 }
 0x1a7   : > { %v1737_v5 = vadd.f32 %v2657_v4, %v1736_v30 }
 0x1a8   : > { %v1643_v32 = vpop.f32.mrf.mxu2  ;;  %v755_v31 = vpop.f32.mrf.mxu0 }
 0x1a9   : > { %1833 = vst.msk [vmem:[%s2664_s19 + $0x180] sm:$0xff] %vm1784_vm1, %v1737_v5  ;;  %v1644_v33 = vadd.f32 %v2657_v4, %v1643_v32  ;;  %v1156_v34 = vpop.f32.mrf.mxu1 }
 0x1aa   : > { %v1157_v36 = vadd.f32 %v1156_v34, %v755_v31 }
 0x1ab   : > { %1802 = vst.msk [vmem:[%s2664_s19 + $0x88] sm:$0xff] %vm1784_vm1, %v1644_v33 }
 0x1ac   : > { %v2245_v37 = vpop.eup %2244  ;;  %v1282_v55 = vadd.f32 %v2828_v61, %v1157_v36 }
 0x1ad   : > { %2090 = vmatmul.msk.f32.gmra.mxu2 %vm440_vm0, %v2245_v37 }
 0x1ae   : > { %2246 = vtanh.f32 %v1282_v55  ;;  %v1739_v38 = vpop.f32.mrf.mxu3 }
 0x1af   : > { %v1740_v39 = vadd.f32 %v2657_v4, %v1739_v38 }
 0x1b0   : > { %v1646_v41 = vpop.f32.mrf.mxu2  ;;  %v758_v42 = vpop.f32.mrf.mxu0 }
 0x1b1   : > { %1834 = vst.msk [vmem:[%s2664_s19 + $0x188] sm:$0xff] %vm1784_vm1, %v1740_v39  ;;  %v1647_v43 = vadd.f32 %v2657_v4, %v1646_v41  ;;  %v1159_v44 = vpop.f32.mrf.mxu1 }
 0x1b2   : > { %v1160_v15 = vadd.f32 %v1159_v44, %v758_v42 }
 0x1b3   : > { %1803 = vst.msk [vmem:[%s2664_s19 + $0x90] sm:$0xff] %vm1784_vm1, %v1647_v43 }
 0x1b4   : > { %v2247_v46 = vpop.eup %2246  ;;  %v1283_v47 = vadd.f32 %v2828_v61, %v1160_v15 }
 0x1b5   : > { %2091 = vmatmul.msk.f32.gmra.mxu2 %vm440_vm0, %v2247_v46 }
 0x1b6   : > { %2248 = vtanh.f32 %v1283_v47  ;;  %v1742_v40 = vpop.f32.mrf.mxu3 }
 0x1b7   : > { %v1743_v48 = vadd.f32 %v2657_v4, %v1742_v40 }
 0x1b8   : > { %v1649_v50 = vpop.f32.mrf.mxu2  ;;  %v761_v2 = vpop.f32.mrf.mxu0 }
 0x1b9   : > { %1835 = vst.msk [vmem:[%s2664_s19 + $0x190] sm:$0xff] %vm1784_vm1, %v1743_v48  ;;  %v1650_v51 = vadd.f32 %v2657_v4, %v1649_v50  ;;  %v1162_v52 = vpop.f32.mrf.mxu1 }
 0x1ba   : > { %v1163_v53 = vadd.f32 %v1162_v52, %v761_v2 }
 0x1bb   : > { %1804 = vst.msk [vmem:[%s2664_s19 + $0x98] sm:$0xff] %vm1784_vm1, %v1650_v51 }
 0x1bc   : > { %v2249_v54 = vpop.eup %2248  ;;  %v1284_v56 = vadd.f32 %v2828_v61, %v1163_v53 }
 0x1bd   : > { %2092 = vmatmul.msk.f32.gmra.mxu2 %vm440_vm0, %v2249_v54 }
 0x1be   : > { %2250 = vtanh.f32 %v1284_v56  ;;  %v1745_v57 = vpop.f32.mrf.mxu3 }
 0x1bf   : > { %v1746_v59 = vadd.f32 %v2657_v4, %v1745_v57 }
 0x1c0   : > { %v1652_v25 = vpop.f32.mrf.mxu2  ;;  %v764_v60 = vpop.f32.mrf.mxu0 }
 0x1c1   : > { %1836 = vst.msk [vmem:[%s2664_s19 + $0x198] sm:$0xff] %vm1784_vm1, %v1746_v59  ;;  %v1653_v62 = vadd.f32 %v2657_v4, %v1652_v25  ;;  %v1165_v13 = vpop.f32.mrf.mxu1 }
 0x1c2   : > { %v1166_v49 = vadd.f32 %v1165_v13, %v764_v60 }
 0x1c3   : > { %1805 = vst.msk [vmem:[%s2664_s19 + $0xa0] sm:$0xff] %vm1784_vm1, %v1653_v62 }
 0x1c4   : > { %v2251_v14 = vpop.eup %2250  ;;  %v1285_v63 = vadd.f32 %v2828_v61, %v1166_v49 }
 0x1c5   : > { %2093 = vmatmul.msk.f32.gmra.mxu2 %vm440_vm0, %v2251_v14 }
 0x1c6   : > { %2252 = vtanh.f32 %v1285_v63  ;;  %v1748_v0 = vpop.f32.mrf.mxu3 }
 0x1c7   : > { %v1749_v1 = vadd.f32 %v2657_v4, %v1748_v0 }
 0x1c8   : > { %v1655_v3 = vpop.f32.mrf.mxu2  ;;  %v767_v6 = vpop.f32.mrf.mxu0 }
 0x1c9   : > { %1837 = vst.msk [vmem:[%s2664_s19 + $0x1a0] sm:$0xff] %vm1784_vm1, %v1749_v1  ;;  %v1656_v7 = vadd.f32 %v2657_v4, %v1655_v3  ;;  %v1168_v8 = vpop.f32.mrf.mxu1 }
 0x1ca   : > { %v1169_v9 = vadd.f32 %v1168_v8, %v767_v6 }
 0x1cb   : > { %1806 = vst.msk [vmem:[%s2664_s19 + $0xa8] sm:$0xff] %vm1784_vm1, %v1656_v7 }
 0x1cc   : > { %v2253_v35 = vpop.eup %2252  ;;  %v1286_v10 = vadd.f32 %v2828_v61, %v1169_v9 }
 0x1cd   : > { %2094 = vmatmul.msk.f32.gmra.mxu2 %vm440_vm0, %v2253_v35 }
 0x1ce   : > { %2254 = vtanh.f32 %v1286_v10  ;;  %v1751_v11 = vpop.f32.mrf.mxu3 }
 0x1cf   : > { %v1752_v12 = vadd.f32 %v2657_v4, %v1751_v11 }
 0x1d0   : > { %v1658_v26 = vpop.f32.mrf.mxu2  ;;  %v770_v16 = vpop.f32.mrf.mxu0 }
 0x1d1   : > { %1838 = vst.msk [vmem:[%s2664_s19 + $0x1a8] sm:$0xff] %vm1784_vm1, %v1752_v12  ;;  %v1659_v58 = vadd.f32 %v2657_v4, %v1658_v26  ;;  %v1171_v22 = vpop.f32.mrf.mxu1 }
 0x1d2   : > { %v1172_v17 = vadd.f32 %v1171_v22, %v770_v16 }
 0x1d3   : > { %1807 = vst.msk [vmem:[%s2664_s19 + $0xb0] sm:$0xff] %vm1784_vm1, %v1659_v58 }
 0x1d4   : > { %v2255_v18 = vpop.eup %2254  ;;  %v1287_v19 = vadd.f32 %v2828_v61, %v1172_v17 }
 0x1d5   : > { %2095 = vmatmul.msk.f32.gmra.mxu2 %vm440_vm0, %v2255_v18 }
 0x1d6   : > { %2256 = vtanh.f32 %v1287_v19  ;;  %v1754_v20 = vpop.f32.mrf.mxu3 }
 0x1d7   : > { %v1755_v21 = vadd.f32 %v2657_v4, %v1754_v20 }
 0x1d8   : > { %v1661_v23 = vpop.f32.mrf.mxu2  ;;  %v773_v45 = vpop.f32.mrf.mxu0 }
 0x1d9   : > { %1839 = vst.msk [vmem:[%s2664_s19 + $0x1b0] sm:$0xff] %vm1784_vm1, %v1755_v21  ;;  %v1662_v24 = vadd.f32 %v2657_v4, %v1661_v23  ;;  %v1174_v27 = vpop.f32.mrf.mxu1 }
 0x1da   : > { %v1175_v28 = vadd.f32 %v1174_v27, %v773_v45 }
 0x1db   : > { %1808 = vst.msk [vmem:[%s2664_s19 + $0xb8] sm:$0xff] %vm1784_vm1, %v1662_v24 }
 0x1dc   : > { %v2257_v29 = vpop.eup %2256  ;;  %v1288_v30 = vadd.f32 %v2828_v61, %v1175_v28 }
 0x1dd   : > { %2096 = vmatmul.msk.f32.gmra.mxu2 %vm440_vm0, %v2257_v29 }
 0x1de   : > { %2258 = vtanh.f32 %v1288_v30  ;;  %v1757_v5 = vpop.f32.mrf.mxu3 }
 0x1df   : > { %v1758_v32 = vadd.f32 %v2657_v4, %v1757_v5 }
 0x1e0   : > { %v1664_v31 = vpop.f32.mrf.mxu2  ;;  %v776_v33 = vpop.f32.mrf.mxu0 }
 0x1e1   : > { %1840 = vst.msk [vmem:[%s2664_s19 + $0x1b8] sm:$0xff] %vm1784_vm1, %v1758_v32  ;;  %v1665_v34 = vadd.f32 %v2657_v4, %v1664_v31  ;;  %v1177_v36 = vpop.f32.mrf.mxu1 }
 0x1e2   : > { %v1178_v37 = vadd.f32 %v1177_v36, %v776_v33  ;;  %v2273_v36 = vld [vmem:[%s3022_s6] ss:$0 sm:$0xff] }
 0x1e3   : > { %1809 = vst.msk [vmem:[%s2664_s19 + $0xc0] sm:$0xff] %vm1784_vm1, %v1665_v34 }
 0x1e4   : > { %v2259_v55 = vpop.eup %2258  ;;  %v1289_v38 = vadd.f32 %v2828_v61, %v1178_v37 }
 0x1e5   : > { %2097 = vmatmul.msk.f32.gmra.mxu2 %vm440_vm0, %v2259_v55 }
 0x1e6   : > { %2260 = vtanh.f32 %v1289_v38  ;;  %v1760_v39 = vpop.f32.mrf.mxu3 }
 0x1e7   : > { %v1761_v41 = vadd.f32 %v2657_v4, %v1760_v39 }
 0x1e8   : > { %v1667_v42 = vpop.f32.mrf.mxu2  ;;  %v779_v43 = vpop.f32.mrf.mxu0 }
 0x1e9   : > { %1841 = vst.msk [vmem:[%s2664_s19 + $0x1c0] sm:$0xff] %vm1784_vm1, %v1761_v41  ;;  %v1668_v44 = vadd.f32 %v2657_v4, %v1667_v42  ;;  %v1180_v15 = vpop.f32.mrf.mxu1 }
 0x1ea   : > { %v1181_v46 = vadd.f32 %v1180_v15, %v779_v43 }
 0x1eb   : > { %1810 = vst.msk [vmem:[%s2664_s19 + $0xc8] sm:$0xff] %vm1784_vm1, %v1668_v44 }
 0x1ec   : > { %v2261_v47 = vpop.eup %2260  ;;  %v1290_v40 = vadd.f32 %v2828_v61, %v1181_v46 }
 0x1ed   : > { %2098 = vmatmul.msk.f32.gmra.mxu2 %vm440_vm0, %v2261_v47 }
 0x1ee   : > { %2262 = vtanh.f32 %v1290_v40  ;;  %v1763_v48 = vpop.f32.mrf.mxu3 }
 0x1ef   : > { %v1764_v50 = vadd.f32 %v2657_v4, %v1763_v48 }
 0x1f0   : > { %v1670_v2 = vpop.f32.mrf.mxu2  ;;  %v782_v51 = vpop.f32.mrf.mxu0 }
 0x1f1   : > { %1842 = vst.msk [vmem:[%s2664_s19 + $0x1c8] sm:$0xff] %vm1784_vm1, %v1764_v50  ;;  %v1671_v52 = vadd.f32 %v2657_v4, %v1670_v2  ;;  %v1183_v53 = vpop.f32.mrf.mxu1 }
 0x1f2   : > { %v1184_v54 = vadd.f32 %v1183_v53, %v782_v51 }
 0x1f3   : > { %1811 = vst.msk [vmem:[%s2664_s19 + $0xd0] sm:$0xff] %vm1784_vm1, %v1671_v52 }
 0x1f4   : > { %v2263_v56 = vpop.eup %2262  ;;  %v1291_v57 = vadd.f32 %v2828_v61, %v1184_v54 }
 0x1f5   : > { %2099 = vmatmul.msk.f32.gmra.mxu2 %vm440_vm0, %v2263_v56 }
 0x1f6   : > { %2264 = vtanh.f32 %v1291_v57  ;;  %v1766_v59 = vpop.f32.mrf.mxu3 }
 0x1f7   : > { %v1767_v25 = vadd.f32 %v2657_v4, %v1766_v59 }
 0x1f8   : > { %v1673_v60 = vpop.f32.mrf.mxu2  ;;  %v785_v62 = vpop.f32.mrf.mxu0 }
 0x1f9   : > { %1843 = vst.msk [vmem:[%s2664_s19 + $0x1d0] sm:$0xff] %vm1784_vm1, %v1767_v25  ;;  %v1674_v13 = vadd.f32 %v2657_v4, %v1673_v60  ;;  %v1186_v49 = vpop.f32.mrf.mxu1 }
 0x1fa   : > { %v1187_v14 = vadd.f32 %v1186_v49, %v785_v62 }
 0x1fb   : > { %1812 = vst.msk [vmem:[%s2664_s19 + $0xd8] sm:$0xff] %vm1784_vm1, %v1674_v13 }
 0x1fc   : > { %v2265_v63 = vpop.eup %2264  ;;  %v1292_v0 = vadd.f32 %v2828_v61, %v1187_v14 }
 0x1fd   : > { %2100 = vmatmul.msk.f32.gmra.mxu2 %vm440_vm0, %v2265_v63 }
 0x1fe   : > { %2266 = vtanh.f32 %v1292_v0  ;;  %v1769_v1 = vpop.f32.mrf.mxu3 }
 0x1ff   : > { %v1770_v3 = vadd.f32 %v2657_v4, %v1769_v1 }
 0x200   : > { %v1676_v6 = vpop.f32.mrf.mxu2  ;;  %v788_v7 = vpop.f32.mrf.mxu0 }
 0x201   : > { %1844 = vst.msk [vmem:[%s2664_s19 + $0x1d8] sm:$0xff] %vm1784_vm1, %v1770_v3  ;;  %v1677_v8 = vadd.f32 %v2657_v4, %v1676_v6  ;;  %v1189_v9 = vpop.f32.mrf.mxu1 }
 0x202   : > { %v1190_v35 = vadd.f32 %v1189_v9, %v788_v7 }
 0x203   : > { %1813 = vst.msk [vmem:[%s2664_s19 + $0xe0] sm:$0xff] %vm1784_vm1, %v1677_v8 }
 0x204   : > { %v2267_v10 = vpop.eup %2266  ;;  %v1293_v11 = vadd.f32 %v2828_v61, %v1190_v35 }
 0x205   : > { %2101 = vmatmul.msk.f32.gmra.mxu2 %vm440_vm0, %v2267_v10 }
 0x206   : > { %2268 = vtanh.f32 %v1293_v11  ;;  %v1772_v12 = vpop.f32.mrf.mxu3 }
 0x207   : > { %v1773_v26 = vadd.f32 %v2657_v4, %v1772_v12 }
 0x208   : > { %v1679_v16 = vpop.f32.mrf.mxu2  ;;  %v791_v58 = vpop.f32.mrf.mxu0 }
 0x209   : > { %1845 = vst.msk [vmem:[%s2664_s19 + $0x1e0] sm:$0xff] %vm1784_vm1, %v1773_v26  ;;  %v1680_v22 = vadd.f32 %v2657_v4, %v1679_v16  ;;  %v1192_v17 = vpop.f32.mrf.mxu1 }
 0x20a   : > { %v1193_v18 = vadd.f32 %v1192_v17, %v791_v58 }
 0x20b   : > { %1814 = vst.msk [vmem:[%s2664_s19 + $0xe8] sm:$0xff] %vm1784_vm1, %v1680_v22 }
 0x20c   : > { %v2269_v19 = vpop.eup %2268  ;;  %v1294_v20 = vadd.f32 %v2828_v61, %v1193_v18 }
 0x20d   : > { %2102 = vmatmul.msk.f32.gmra.mxu2 %vm440_vm0, %v2269_v19 }
 0x20e   : > { %2270 = vtanh.f32 %v1294_v20  ;;  %v1775_v21 = vpop.f32.mrf.mxu3 }
 0x20f   : > { %v1776_v23 = vadd.f32 %v2657_v4, %v1775_v21 }
 0x210   : > { %v1682_v45 = vpop.f32.mrf.mxu2 }
 0x211   : > { %1846 = vst.msk [vmem:[%s2664_s19 + $0x1e8] sm:$0xff] %vm1784_vm1, %v1776_v23  ;;  %v1683_v24 = vadd.f32 %v2657_v4, %v1682_v45 }
 0x213   : > { %1815 = vst.msk [vmem:[%s2664_s19 + $0xf0] sm:$0xff] %vm1784_vm1, %v1683_v24 }
 0x214   : > { %v2271_v27 = vpop.eup %2270 }
 0x215   : > { %2103 = vmatmul.msk.f32.gmra.mxu2 %vm440_vm0, %v2271_v27 }
 0x216   : > { %v1778_v61 = vpop.f32.mrf.mxu3 }
 0x217   : > { %v1779_v28 = vadd.f32 %v2657_v4, %v1778_v61 }
 0x218   : > { %v1685_v29 = vpop.f32.mrf.mxu2 }
 0x219   : > { %1847 = vst.msk [vmem:[%s2664_s19 + $0x1f0] sm:$0xff] %vm1784_vm1, %v1779_v28  ;;  %v1686_v30 = vadd.f32 %v2657_v4, %v1685_v29 }
 0x21b   : > { %1816 = vst.msk [vmem:[%s2664_s19 + $0xf8] sm:$0xff] %vm1784_vm1, %v1686_v30 }
 0x21e   : > { %v1781_v5 = vpop.f32.mrf.mxu3 }
 0x21f   : > { %v1782_v32 = vadd.f32 %v2657_v4, %v1781_v5 }
 0x220   : > { %v1688_v31 = vpop.f32.mrf.mxu2 }
 0x221   : > { %1848 = vst.msk [vmem:[%s2664_s19 + $0x1f8] sm:$0xff] %vm1784_vm1, %v1782_v32  ;;  %v1689_v33 = vadd.f32 %v2657_v4, %v1688_v31 }
 0x223   : > { %1817 = vst.msk [vmem:[%s2664_s19 + $0x100] sm:$0xff] %vm1784_vm1, %v1689_v33 }
 0x228   : > { %v1691_v34 = vpop.f32.mrf.mxu2 }
 0x229   : > { %v1692_v37 = vadd.f32 %v2273_v36, %v1691_v34 }
 0x22b   : > { %1818 = vst.msk [vmem:[%s2664_s19 + $0x108] sm:$0xff] %vm1784_vm1, %v1692_v37 }
 0x230   : > { %v1694_v55 = vpop.f32.mrf.mxu2 }
 0x231   : > { %v1695_v38 = vadd.f32 %v2273_v36, %v1694_v55 }
 0x233   : > { %1819 = vst.msk [vmem:[%s2664_s19 + $0x110] sm:$0xff] %vm1784_vm1, %v1695_v38 }
 0x238   : > { %v1697_v39 = vpop.f32.mrf.mxu2 }
 0x239   : > { %v1698_v41 = vadd.f32 %v2273_v36, %v1697_v39 }
 0x23b   : > { %1820 = vst.msk [vmem:[%s2664_s19 + $0x118] sm:$0xff] %vm1784_vm1, %v1698_v41 }
 0x240   : > { %v1700_v4 = vpop.f32.mrf.mxu2 }
 0x241   : > { %v1701_v42 = vadd.f32 %v2273_v36, %v1700_v4 }
 0x243   : > { %1821 = vst.msk [vmem:[%s2664_s19 + $0x120] sm:$0xff] %vm1784_vm1, %v1701_v42 }
 0x248   : > { %v1703_v43 = vpop.f32.mrf.mxu2 }
 0x249   : > { %v1704_v44 = vadd.f32 %v2273_v36, %v1703_v43 }
 0x24b   : > { %1822 = vst.msk [vmem:[%s2664_s19 + $0x128] sm:$0xff] %vm1784_vm1, %v1704_v44 }
 0x250   : > { %v1706_v15 = vpop.f32.mrf.mxu2 }
 0x251   : > { %v1707_v46 = vadd.f32 %v2273_v36, %v1706_v15 }
 0x253   : > { %1823 = vst.msk [vmem:[%s2664_s19 + $0x130] sm:$0xff] %vm1784_vm1, %v1707_v46 }
 0x258   : > { %v1709_v47 = vpop.f32.mrf.mxu2 }
 0x259   : > { %v1710_v40 = vadd.f32 %v2273_v36, %v1709_v47 }
 0x25b   : > { %1824 = vst.msk [vmem:[%s2664_s19 + $0x138] sm:$0xff] %vm1784_vm1, %v1710_v40 }
 0x260   : > { %v1712_v48 = vpop.f32.mrf.mxu2 }
 0x261   : > { %v1713_v50 = vadd.f32 %v2273_v36, %v1712_v48 }
 0x263   : > { %1825 = vst.msk [vmem:[%s2664_s19 + $0x140] sm:$0xff] %vm1784_vm1, %v1713_v50 }
 0x268   : > { %v1715_v2 = vpop.f32.mrf.mxu2 }
 0x269   : > { %v1716_v51 = vadd.f32 %v2273_v36, %v1715_v2 }
 0x26b   : > { %1826 = vst.msk [vmem:[%s2664_s19 + $0x148] sm:$0xff] %vm1784_vm1, %v1716_v51 }
 0x270   : > { %v1718_v52 = vpop.f32.mrf.mxu2 }
 0x271   : > { %v1719_v53 = vadd.f32 %v2273_v36, %v1718_v52 }
 0x273   : > { %1827 = vst.msk [vmem:[%s2664_s19 + $0x150] sm:$0xff] %vm1784_vm1, %v1719_v53 }
 0x278   : > { %v1721_v54 = vpop.f32.mrf.mxu2 }
 0x279   : > { %v1722_v56 = vadd.f32 %v2273_v36, %v1721_v54 }
 0x27b   : > { %1828 = vst.msk [vmem:[%s2664_s19 + $0x158] sm:$0xff] %vm1784_vm1, %v1722_v56 }
 0x280   : > { %v1724_v57 = vpop.f32.mrf.mxu2 }
 0x281   : > { %v1725_v59 = vadd.f32 %v2273_v36, %v1724_v57 }
 0x283   : > { %1829 = vst.msk [vmem:[%s2664_s19 + $0x160] sm:$0xff] %vm1784_vm1, %v1725_v59 }
 0x288   : > { %v1727_v25 = vpop.f32.mrf.mxu2 }
 0x289   : > { %v1728_v60 = vadd.f32 %v2273_v36, %v1727_v25 }
 0x28b   : > { %1830 = vst.msk [vmem:[%s2664_s19 + $0x168] sm:$0xff] %vm1784_vm1, %v1728_v60 }
 0x290   : > { %v1730_v62 = vpop.f32.mrf.mxu2 }
 0x291   : > { %v1731_v13 = vadd.f32 %v2273_v36, %v1730_v62 }
 0x293   : > { %1831 = vst.msk [vmem:[%s2664_s19 + $0x170] sm:$0xff] %vm1784_vm1, %v1731_v13 }
 0x298   : > { %v1733_v49 = vpop.f32.mrf.mxu2 }
 0x299   : > { %v1734_v14 = vadd.f32 %v2273_v36, %v1733_v49 }
 0x29b   : > { %1832 = vst.msk [vmem:[%s2664_s19 + $0x178] sm:$0xff] %vm1784_vm1, %v1734_v14 }
 0x29c PF: > { %s17_s24 = sadd.s32 1, %s2280_s24  }
 0x29d   : > { %p14_p4 = scmp.ge.s32.totalorder %s17_s24, 4  }
 0x29f   :  { %16 = sbr.rel (!%p14_p4) target bundleno = 1 (0x1), region = 81 }

</bundles_post_ra>
